<compile_context>
chip_gen: v7x
topology: tpu7x:2x2x1
jax: 0.10.0
libtpu: 0.0.40
codegen_flags: <defaults>
</compile_context>

<pallas_src>
import functools

import jax
import jax.numpy as jnp
from jax.experimental import pallas as pl
from jax.experimental.pallas import tpu as pltpu


# -----------------------------------------------------------------------------
# Import-time capability / hardware probes (decided once, never in the forward)
# -----------------------------------------------------------------------------

def _probe_single_buffered_params() -> bool:
    """Does this JAX/Mosaic build accept pipeline_mode=pl.Buffered(1)?"""
    try:
        spec = pl.BlockSpec((8, 128), lambda i: (0, 0),
                            pipeline_mode=pl.Buffered(buffer_count=1))

        def _k(a_ref, o_ref):
            o_ref[...] = a_ref[...] + 1.0

        fn = pl.pallas_call(
            _k,
            out_shape=jax.ShapeDtypeStruct((8, 128), jnp.float32),
            grid_spec=pltpu.PrefetchScalarGridSpec(
                num_scalar_prefetch=0,
                grid=(1,),
                in_specs=[spec],
                out_specs=pl.BlockSpec((8, 128), lambda i: (0, 0)),
            ),
        )
        jax.jit(fn).lower(jax.ShapeDtypeStruct((8, 128), jnp.float32)).compile()
        return True
    except Exception:
        return False


def _vmem_cap_bytes() -> int:
    """Per-generation VMEM ceiling: ~75% of physical, capped at 100 MiB."""
    try:
        cap = int(pltpu.get_tpu_info().vmem_capacity_bytes)
        return int(min(0.75 * cap, 100 << 20))
    except Exception:
        return 48 << 20  # safe on v5e/v6e (128 MiB) and v7x (64 MiB)


_SINGLE_BUFFER_PARAMS = _probe_single_buffered_params()
_VMEM_CAP_BYTES = max(_vmem_cap_bytes(), 32 << 20)


# -----------------------------------------------------------------------------
# Element-wise / normalization helpers (shared by kernel and matched reference)
# -----------------------------------------------------------------------------

def _layer_norm(h, gamma, beta, eps=1e-5):
    # One-pass mean/variance: the two reductions are independent, so they can
    # overlap on the XLUs; var is clamped at 0 against E[x^2]-mu^2 cancellation.
    inv_d = 1.0 / h.shape[-1]
    s1 = jnp.sum(h, axis=-1, keepdims=True)
    s2 = jnp.sum(h * h, axis=-1, keepdims=True)
    mu = s1 * inv_d
    var = jnp.maximum(s2 * inv_d - mu * mu, 0.0)
    return (h - mu) * jax.lax.rsqrt(var + eps) * gamma + beta


def _leaky_relu(h, slope=0.2):
    # max(h, slope*h) == LeakyReLU(slope) for slope in (0, 1): mul+max (2 ops)
    # instead of cmp+select+mul (3 ops).
    return jnp.maximum(h, slope * h)


# -----------------------------------------------------------------------------
# Kernel
# -----------------------------------------------------------------------------

def discriminator_kernel(
    x_ref,
    w1_ref, b1_ref, g1_ref, be1_ref,
    w2_ref, b2_ref, g2_ref, be2_ref,
    w3_ref, b3_ref, g3_ref, be3_ref,
    w4_ref, b4_ref,
    o_ref,
):
    """One batch tile: 3x (Linear -> LayerNorm -> LeakyReLU), head, sigmoid."""
    x = x_ref[...]                                         # (tile, data_dim)

    # Block 1: cast the MXU operand to the weight dtype (bf16) right before
    # the dot; accumulation and all element-wise work stay in f32.
    h = jnp.dot(x.astype(w1_ref.dtype), w1_ref[...],
                preferred_element_type=jnp.float32) + b1_ref[...]
    h = _leaky_relu(_layer_norm(h, g1_ref[...], be1_ref[...]))

    # Block 2
    h = jnp.dot(h.astype(w2_ref.dtype), w2_ref[...],
                preferred_element_type=jnp.float32) + b2_ref[...]
    h = _leaky_relu(_layer_norm(h, g2_ref[...], be2_ref[...]))

    # Block 3
    h = jnp.dot(h.astype(w3_ref.dtype), w3_ref[...],
                preferred_element_type=jnp.float32) + b3_ref[...]
    h = _leaky_relu(_layer_norm(h, g3_ref[...], be3_ref[...]))

    # Head Linear(model_dim, 1) + Sigmoid: N=1 is wasteful on the MXU, so do a
    # VPU multiply + lane reduction and write the logits as a lane-dense row.
    logit = jnp.sum(h * w4_ref[...], axis=-1)              # (tile,)
    logit = logit[None, :] + b4_ref[0, 0]                  # scalar bias (SMEM)
    o_ref[...] = jax.nn.sigmoid(logit).astype(o_ref.dtype)


def _param_spec(p):
    """Full-shape, constant-index (resident) BlockSpec for a parameter."""
    index_map = lambda i, _nd=p.ndim: (0,) * _nd
    if _SINGLE_BUFFER_PARAMS:
        # Constant index_map -> nothing to prefetch; single VMEM buffer halves
        # the resident-parameter footprint.
        return pl.BlockSpec(p.shape, index_map,
                            pipeline_mode=pl.Buffered(buffer_count=1))
    return pl.BlockSpec(p.shape, index_map)


# -----------------------------------------------------------------------------
# Forward wrapper (jit; batch_tile is a static tuning knob)
# -----------------------------------------------------------------------------

@functools.partial(jax.jit, static_argnames=("batch_tile",))
def discriminator_forward(x, params, *, batch_tile=512):
    B, data_dim = x.shape
    model_dim = params[0].shape[1]

    if batch_tile <= 0 or batch_tile % 128 != 0:
        raise ValueError("batch_tile must be a positive multiple of 128")
    # Don't use a tile larger than the 128-rounded batch.
    tile = min(batch_tile, ((B + 127) // 128) * 128)
    num_tiles = pl.cdiv(B, tile)

    # ---- VMEM budget (kept in sync with the tile / resident params) --------
    vmem_params = params[:-1]                       # b4 lives in SMEM
    param_bytes = sum(int(p.size) * jnp.dtype(p.dtype).itemsize
                      for p in vmem_params)
    param_bufs = 1 if _SINGLE_BUFFER_PARAMS else 2
    x_bytes = 2 * tile * data_dim * jnp.dtype(x.dtype).itemsize   # dbl-buffered
    o_bytes = 2 * tile * jnp.dtype(x.dtype).itemsize
    act_bytes = 6 * tile * model_dim * 4                          # f32 work set
    est = x_bytes + o_bytes + param_bufs * param_bytes + act_bytes + (1 << 20)
    vmem_limit = int(min(max(est, 32 << 20), _VMEM_CAP_BYTES))

    # ---- Specs --------------------------------------------------------------
    x_spec = pl.BlockSpec((tile, data_dim), lambda i: (i, 0))
    # Lane-dense output: one (1, tile) row per grid step into a (1, B) slab.
    # A ragged final block is handled by masked out-of-bounds stores (and the
    # matching garbage input rows stay row-local) -> no jnp.pad HBM pass.
    out_spec = pl.BlockSpec((1, tile), lambda i: (0, i))
    in_specs = (
        [x_spec]
        + [_param_spec(p) for p in vmem_params]
        + [pl.BlockSpec(memory_space=pltpu.MemorySpace.SMEM)]    # b4 (1,1) scalar
    )

    out = pl.pallas_call(
        discriminator_kernel,
        out_shape=jax.ShapeDtypeStruct((1, B), x.dtype),
        grid_spec=pltpu.PrefetchScalarGridSpec(
            num_scalar_prefetch=0,
            grid=(num_tiles,),
            in_specs=in_specs,
            out_specs=out_spec,
        ),
        compiler_params=pltpu.CompilerParams(
            dimension_semantics=("parallel",),
            vmem_limit_bytes=vmem_limit,
        ),
    )(x, *params)

    return out.reshape(B, 1)


# -----------------------------------------------------------------------------
# Parameter init + references
# -----------------------------------------------------------------------------

def init_params(key, data_dim, model_dim, w_dtype=jnp.bfloat16):
    """Deterministic synthetic init (small-std GAN-style init).

    w1..w3 are stored bf16 (MXU operands); biases / LayerNorm affines stay f32.
    The head weight is a (1, model_dim) f32 row (VPU reduction); b4 is (1, 1).
    """
    std = 0.02
    ks = jax.random.split(key, 4)

    def lin(k, fan_in, fan_out, dtype):
        kw, _ = jax.random.split(k)
        w = (jax.random.normal(kw, (fan_in, fan_out), jnp.float32) * std).astype(dtype)
        b = jnp.zeros((1, fan_out), jnp.float32)
        return w, b

    w1, b1 = lin(ks[0], data_dim, model_dim, w_dtype)
    w2, b2 = lin(ks[1], model_dim, model_dim, w_dtype)
    w3, b3 = lin(ks[2], model_dim, model_dim, w_dtype)

    kw4, _ = jax.random.split(ks[3])
    w4 = jax.random.normal(kw4, (1, model_dim), jnp.float32) * std
    b4 = jnp.zeros((1, 1), jnp.float32)

    ones = lambda: jnp.ones((1, model_dim), jnp.float32)
    zeros = lambda: jnp.zeros((1, model_dim), jnp.float32)
    return (w1, b1, ones(), zeros(),
            w2, b2, ones(), zeros(),
            w3, b3, ones(), zeros(),
            w4, b4)


def reference_forward_matched(x, params):
    """Reference mirroring the kernel's bf16-operand / f32-accumulate math."""
    (w1, b1, g1, be1, w2, b2, g2, be2, w3, b3, g3, be3, w4, b4) = params

    def mm(a, w):
        return jnp.dot(a.astype(w.dtype), w, preferred_element_type=jnp.float32)

    h = _leaky_relu(_layer_norm(mm(x, w1) + b1, g1, be1))
    h = _leaky_relu(_layer_norm(mm(h, w2) + b2, g2, be2))
    h = _leaky_relu(_layer_norm(mm(h, w3) + b3, g3, be3))
    logit = jnp.sum(h * w4, axis=-1, keepdims=True) + b4
    return jax.nn.sigmoid(logit)


def reference_forward_f32(x, params):
    """Pure-f32 reference matching the PyTorch module semantics."""
    (w1, b1, g1, be1, w2, b2, g2, be2, w3, b3, g3, be3, w4, b4) = params

    def ln(h, gamma, beta, eps=1e-5):
        mu = jnp.mean(h, axis=-1, keepdims=True)
        var = jnp.mean((h - mu) ** 2, axis=-1, keepdims=True)
        return (h - mu) / jnp.sqrt(var + eps) * gamma + beta

    def lrelu(h):
        return jnp.where(h > 0, h, 0.2 * h)

    w1f, w2f, w3f = (w.astype(jnp.float32) for w in (w1, w2, w3))
    h = lrelu(ln(x @ w1f + b1, g1, be1))
    h = lrelu(ln(h @ w2f + b2, g2, be2))
    h = lrelu(ln(h @ w3f + b3, g3, be3))
    return jax.nn.sigmoid(jnp.sum(h * w4, axis=-1, keepdims=True) + b4)


# -----------------------------------------------------------------------------
# Test harness
# -----------------------------------------------------------------------------

if __name__ == "__main__":
    # Small deterministic shapes; ragged batch (200 % 128 != 0) exercises the
    # pad-free partial-last-block path.
    batch, data_dim, model_dim = 200, 16, 32

    key = jax.random.PRNGKey(0)
    kx, kp = jax.random.split(key)
    x = jax.random.normal(kx, (batch, data_dim), jnp.float32)
    params = init_params(kp, data_dim, model_dim)

    # Small explicit tile -> grid of 2 (one full + one partial block).
    out = discriminator_forward(x, params, batch_tile=128)
    out = jax.block_until_ready(out)
    assert out.shape == (batch, 1)
    assert bool(jnp.all(jnp.isfinite(out)))

    # Default (large) tile path: tile clamps to 256, grid of 1.
    out_big = jax.block_until_ready(discriminator_forward(x, params))
    assert out_big.shape == (batch, 1)

    ref_matched = reference_forward_matched(x, params)   # same rounding model
    ref_f32 = reference_forward_f32(x, params)           # module semantics
    assert jnp.allclose(out, ref_matched, atol=1e-4, rtol=1e-4), \
        "mismatch vs matched reference"
    assert jnp.allclose(out_big, ref_matched, atol=1e-4, rtol=1e-4), \
        "mismatch vs matched reference (default tile)"
    assert jnp.allclose(out, ref_f32, atol=5e-3, rtol=5e-3), \
        "mismatch vs f32 reference"

    print("KERNEL_OK")
</pallas_src>

<mosaic_0001>
module attributes {stable_mosaic.version = 11 : i64} {
  func.func @discriminator_kernel(%arg0: i32, %arg1: memref<128x16xf32, #tpu.memory_space<vmem>>, %arg2: memref<16x32xbf16, #tpu.memory_space<vmem>>, %arg3: memref<1x32xf32, #tpu.memory_space<vmem>>, %arg4: memref<1x32xf32, #tpu.memory_space<vmem>>, %arg5: memref<1x32xf32, #tpu.memory_space<vmem>>, %arg6: memref<32x32xbf16, #tpu.memory_space<vmem>>, %arg7: memref<1x32xf32, #tpu.memory_space<vmem>>, %arg8: memref<1x32xf32, #tpu.memory_space<vmem>>, %arg9: memref<1x32xf32, #tpu.memory_space<vmem>>, %arg10: memref<32x32xbf16, #tpu.memory_space<vmem>>, %arg11: memref<1x32xf32, #tpu.memory_space<vmem>>, %arg12: memref<1x32xf32, #tpu.memory_space<vmem>>, %arg13: memref<1x32xf32, #tpu.memory_space<vmem>>, %arg14: memref<1x32xf32, #tpu.memory_space<vmem>>, %arg15: memref<1x1xf32, #tpu.memory_space<smem>>, %arg16: memref<1x128xf32, #tpu.memory_space<vmem>>) attributes {dimension_semantics = [#tpu.dimension_semantics<parallel>], iteration_bounds = array<i64: 2>, scalar_prefetch = 0 : i64, scratch_operands = 0 : i64, tpu.core_type = #tpu.core_type<tc>, window_params = [{transform_indices = @transform_0, window_bounds = array<i64: 128, 16>}, {pipeline_mode = #tpu.pipeline_mode<synchronous>, transform_indices = @transform_1, window_bounds = array<i64: 16, 32>}, {pipeline_mode = #tpu.pipeline_mode<synchronous>, transform_indices = @transform_2, window_bounds = array<i64: 1, 32>}, {pipeline_mode = #tpu.pipeline_mode<synchronous>, transform_indices = @transform_3, window_bounds = array<i64: 1, 32>}, {pipeline_mode = #tpu.pipeline_mode<synchronous>, transform_indices = @transform_4, window_bounds = array<i64: 1, 32>}, {pipeline_mode = #tpu.pipeline_mode<synchronous>, transform_indices = @transform_5, window_bounds = array<i64: 32, 32>}, {pipeline_mode = #tpu.pipeline_mode<synchronous>, transform_indices = @transform_6, window_bounds = array<i64: 1, 32>}, {pipeline_mode = #tpu.pipeline_mode<synchronous>, transform_indices = @transform_7, window_bounds = array<i64: 1, 32>}, {pipeline_mode = #tpu.pipeline_mode<synchronous>, transform_indices = @transform_8, window_bounds = array<i64: 1, 32>}, {pipeline_mode = #tpu.pipeline_mode<synchronous>, transform_indices = @transform_9, window_bounds = array<i64: 32, 32>}, {pipeline_mode = #tpu.pipeline_mode<synchronous>, transform_indices = @transform_10, window_bounds = array<i64: 1, 32>}, {pipeline_mode = #tpu.pipeline_mode<synchronous>, transform_indices = @transform_11, window_bounds = array<i64: 1, 32>}, {pipeline_mode = #tpu.pipeline_mode<synchronous>, transform_indices = @transform_12, window_bounds = array<i64: 1, 32>}, {pipeline_mode = #tpu.pipeline_mode<synchronous>, transform_indices = @transform_13, window_bounds = array<i64: 1, 32>}, {transform_indices = @transform_14, window_bounds = array<i64: 1, 1>}, {transform_indices = @transform_15, window_bounds = array<i64: 1, 128>}]} {
    %c0 = arith.constant 0 : index
    %c0_0 = arith.constant 0 : index
    %0 = vector.load %arg1[%c0, %c0_0] : memref<128x16xf32, #tpu.memory_space<vmem>>, vector<128x16xf32>
    %1 = arith.truncf %0 : vector<128x16xf32> to vector<128x16xbf16>
    %c0_1 = arith.constant 0 : index
    %c0_2 = arith.constant 0 : index
    %2 = vector.load %arg2[%c0_1, %c0_2] : memref<16x32xbf16, #tpu.memory_space<vmem>>, vector<16x32xbf16>
    %cst = arith.constant dense<0.000000e+00> : vector<128x32xf32>
    %3 = tpu.matmul %1, %2, %cst {dimension_numbers = #tpu.dot_dimension_numbers<[1], [0], [0], [1], [0, 0, 1, 1], [], []>} : vector<128x16xbf16>, vector<16x32xbf16>, vector<128x32xf32> -> vector<128x32xf32>
    %c0_3 = arith.constant 0 : index
    %c0_4 = arith.constant 0 : index
    %4 = vector.load %arg3[%c0_3, %c0_4] : memref<1x32xf32, #tpu.memory_space<vmem>>, vector<1x32xf32>
    %5 = vector.broadcast %4 : vector<1x32xf32> to vector<128x32xf32>
    %6 = arith.addf %3, %5 : vector<128x32xf32>
    %c0_5 = arith.constant 0 : index
    %c0_6 = arith.constant 0 : index
    %7 = vector.load %arg4[%c0_5, %c0_6] : memref<1x32xf32, #tpu.memory_space<vmem>>, vector<1x32xf32>
    %c0_7 = arith.constant 0 : index
    %c0_8 = arith.constant 0 : index
    %8 = vector.load %arg5[%c0_7, %c0_8] : memref<1x32xf32, #tpu.memory_space<vmem>>, vector<1x32xf32>
    %cst_9 = arith.constant dense<0.000000e+00> : vector<128xf32>
    %9 = vector.multi_reduction <add>, %6, %cst_9 [1] : vector<128x32xf32> to vector<128xf32>
    %10 = vector.shape_cast %9 : vector<128xf32> to vector<128x1xf32>
    %11 = arith.mulf %6, %6 : vector<128x32xf32>
    %cst_10 = arith.constant dense<0.000000e+00> : vector<128xf32>
    %12 = vector.multi_reduction <add>, %11, %cst_10 [1] : vector<128x32xf32> to vector<128xf32>
    %13 = vector.shape_cast %12 : vector<128xf32> to vector<128x1xf32>
    %cst_11 = arith.constant 3.125000e-02 : f32
    %14 = vector.broadcast %cst_11 : f32 to vector<128x1xf32>
    %15 = arith.mulf %10, %14 : vector<128x1xf32>
    %cst_12 = arith.constant 3.125000e-02 : f32
    %16 = vector.broadcast %cst_12 : f32 to vector<128x1xf32>
    %17 = arith.mulf %13, %16 : vector<128x1xf32>
    %18 = arith.mulf %15, %15 : vector<128x1xf32>
    %19 = arith.subf %17, %18 : vector<128x1xf32>
    %cst_13 = arith.constant 0.000000e+00 : f32
    %20 = vector.broadcast %cst_13 : f32 to vector<128x1xf32>
    %21 = arith.maximumf %19, %20 : vector<128x1xf32>
    %22 = vector.broadcast %15 : vector<128x1xf32> to vector<128x32xf32>
    %23 = arith.subf %6, %22 : vector<128x32xf32>
    %cst_14 = arith.constant 9.99999974E-6 : f32
    %24 = vector.broadcast %cst_14 : f32 to vector<128x1xf32>
    %25 = arith.addf %21, %24 : vector<128x1xf32>
    %26 = math.rsqrt %25 : vector<128x1xf32>
    %27 = vector.broadcast %26 : vector<128x1xf32> to vector<128x32xf32>
    %28 = arith.mulf %23, %27 : vector<128x32xf32>
    %29 = vector.broadcast %7 : vector<1x32xf32> to vector<128x32xf32>
    %30 = arith.mulf %28, %29 : vector<128x32xf32>
    %31 = vector.broadcast %8 : vector<1x32xf32> to vector<128x32xf32>
    %32 = arith.addf %30, %31 : vector<128x32xf32>
    %cst_15 = arith.constant 2.000000e-01 : f32
    %33 = vector.broadcast %cst_15 : f32 to vector<128x32xf32>
    %34 = arith.mulf %33, %32 : vector<128x32xf32>
    %35 = arith.maximumf %32, %34 : vector<128x32xf32>
    %36 = arith.truncf %35 : vector<128x32xf32> to vector<128x32xbf16>
    %c0_16 = arith.constant 0 : index
    %c0_17 = arith.constant 0 : index
    %37 = vector.load %arg6[%c0_16, %c0_17] : memref<32x32xbf16, #tpu.memory_space<vmem>>, vector<32x32xbf16>
    %cst_18 = arith.constant dense<0.000000e+00> : vector<128x32xf32>
    %38 = tpu.matmul %36, %37, %cst_18 {dimension_numbers = #tpu.dot_dimension_numbers<[1], [0], [0], [1], [0, 0, 1, 1], [], []>} : vector<128x32xbf16>, vector<32x32xbf16>, vector<128x32xf32> -> vector<128x32xf32>
    %c0_19 = arith.constant 0 : index
    %c0_20 = arith.constant 0 : index
    %39 = vector.load %arg7[%c0_19, %c0_20] : memref<1x32xf32, #tpu.memory_space<vmem>>, vector<1x32xf32>
    %40 = vector.broadcast %39 : vector<1x32xf32> to vector<128x32xf32>
    %41 = arith.addf %38, %40 : vector<128x32xf32>
    %c0_21 = arith.constant 0 : index
    %c0_22 = arith.constant 0 : index
    %42 = vector.load %arg8[%c0_21, %c0_22] : memref<1x32xf32, #tpu.memory_space<vmem>>, vector<1x32xf32>
    %c0_23 = arith.constant 0 : index
    %c0_24 = arith.constant 0 : index
    %43 = vector.load %arg9[%c0_23, %c0_24] : memref<1x32xf32, #tpu.memory_space<vmem>>, vector<1x32xf32>
    %cst_25 = arith.constant dense<0.000000e+00> : vector<128xf32>
    %44 = vector.multi_reduction <add>, %41, %cst_25 [1] : vector<128x32xf32> to vector<128xf32>
    %45 = vector.shape_cast %44 : vector<128xf32> to vector<128x1xf32>
    %46 = arith.mulf %41, %41 : vector<128x32xf32>
    %cst_26 = arith.constant dense<0.000000e+00> : vector<128xf32>
    %47 = vector.multi_reduction <add>, %46, %cst_26 [1] : vector<128x32xf32> to vector<128xf32>
    %48 = vector.shape_cast %47 : vector<128xf32> to vector<128x1xf32>
    %cst_27 = arith.constant 3.125000e-02 : f32
    %49 = vector.broadcast %cst_27 : f32 to vector<128x1xf32>
    %50 = arith.mulf %45, %49 : vector<128x1xf32>
    %cst_28 = arith.constant 3.125000e-02 : f32
    %51 = vector.broadcast %cst_28 : f32 to vector<128x1xf32>
    %52 = arith.mulf %48, %51 : vector<128x1xf32>
    %53 = arith.mulf %50, %50 : vector<128x1xf32>
    %54 = arith.subf %52, %53 : vector<128x1xf32>
    %cst_29 = arith.constant 0.000000e+00 : f32
    %55 = vector.broadcast %cst_29 : f32 to vector<128x1xf32>
    %56 = arith.maximumf %54, %55 : vector<128x1xf32>
    %57 = vector.broadcast %50 : vector<128x1xf32> to vector<128x32xf32>
    %58 = arith.subf %41, %57 : vector<128x32xf32>
    %cst_30 = arith.constant 9.99999974E-6 : f32
    %59 = vector.broadcast %cst_30 : f32 to vector<128x1xf32>
    %60 = arith.addf %56, %59 : vector<128x1xf32>
    %61 = math.rsqrt %60 : vector<128x1xf32>
    %62 = vector.broadcast %61 : vector<128x1xf32> to vector<128x32xf32>
    %63 = arith.mulf %58, %62 : vector<128x32xf32>
    %64 = vector.broadcast %42 : vector<1x32xf32> to vector<128x32xf32>
    %65 = arith.mulf %63, %64 : vector<128x32xf32>
    %66 = vector.broadcast %43 : vector<1x32xf32> to vector<128x32xf32>
    %67 = arith.addf %65, %66 : vector<128x32xf32>
    %cst_31 = arith.constant 2.000000e-01 : f32
    %68 = vector.broadcast %cst_31 : f32 to vector<128x32xf32>
    %69 = arith.mulf %68, %67 : vector<128x32xf32>
    %70 = arith.maximumf %67, %69 : vector<128x32xf32>
    %71 = arith.truncf %70 : vector<128x32xf32> to vector<128x32xbf16>
    %c0_32 = arith.constant 0 : index
    %c0_33 = arith.constant 0 : index
    %72 = vector.load %arg10[%c0_32, %c0_33] : memref<32x32xbf16, #tpu.memory_space<vmem>>, vector<32x32xbf16>
    %cst_34 = arith.constant dense<0.000000e+00> : vector<128x32xf32>
    %73 = tpu.matmul %71, %72, %cst_34 {dimension_numbers = #tpu.dot_dimension_numbers<[1], [0], [0], [1], [0, 0, 1, 1], [], []>} : vector<128x32xbf16>, vector<32x32xbf16>, vector<128x32xf32> -> vector<128x32xf32>
    %c0_35 = arith.constant 0 : index
    %c0_36 = arith.constant 0 : index
    %74 = vector.load %arg11[%c0_35, %c0_36] : memref<1x32xf32, #tpu.memory_space<vmem>>, vector<1x32xf32>
    %75 = vector.broadcast %74 : vector<1x32xf32> to vector<128x32xf32>
    %76 = arith.addf %73, %75 : vector<128x32xf32>
    %c0_37 = arith.constant 0 : index
    %c0_38 = arith.constant 0 : index
    %77 = vector.load %arg12[%c0_37, %c0_38] : memref<1x32xf32, #tpu.memory_space<vmem>>, vector<1x32xf32>
    %c0_39 = arith.constant 0 : index
    %c0_40 = arith.constant 0 : index
    %78 = vector.load %arg13[%c0_39, %c0_40] : memref<1x32xf32, #tpu.memory_space<vmem>>, vector<1x32xf32>
    %cst_41 = arith.constant dense<0.000000e+00> : vector<128xf32>
    %79 = vector.multi_reduction <add>, %76, %cst_41 [1] : vector<128x32xf32> to vector<128xf32>
    %80 = vector.shape_cast %79 : vector<128xf32> to vector<128x1xf32>
    %81 = arith.mulf %76, %76 : vector<128x32xf32>
    %cst_42 = arith.constant dense<0.000000e+00> : vector<128xf32>
    %82 = vector.multi_reduction <add>, %81, %cst_42 [1] : vector<128x32xf32> to vector<128xf32>
    %83 = vector.shape_cast %82 : vector<128xf32> to vector<128x1xf32>
    %cst_43 = arith.constant 3.125000e-02 : f32
    %84 = vector.broadcast %cst_43 : f32 to vector<128x1xf32>
    %85 = arith.mulf %80, %84 : vector<128x1xf32>
    %cst_44 = arith.constant 3.125000e-02 : f32
    %86 = vector.broadcast %cst_44 : f32 to vector<128x1xf32>
    %87 = arith.mulf %83, %86 : vector<128x1xf32>
    %88 = arith.mulf %85, %85 : vector<128x1xf32>
    %89 = arith.subf %87, %88 : vector<128x1xf32>
    %cst_45 = arith.constant 0.000000e+00 : f32
    %90 = vector.broadcast %cst_45 : f32 to vector<128x1xf32>
    %91 = arith.maximumf %89, %90 : vector<128x1xf32>
    %92 = vector.broadcast %85 : vector<128x1xf32> to vector<128x32xf32>
    %93 = arith.subf %76, %92 : vector<128x32xf32>
    %cst_46 = arith.constant 9.99999974E-6 : f32
    %94 = vector.broadcast %cst_46 : f32 to vector<128x1xf32>
    %95 = arith.addf %91, %94 : vector<128x1xf32>
    %96 = math.rsqrt %95 : vector<128x1xf32>
    %97 = vector.broadcast %96 : vector<128x1xf32> to vector<128x32xf32>
    %98 = arith.mulf %93, %97 : vector<128x32xf32>
    %99 = vector.broadcast %77 : vector<1x32xf32> to vector<128x32xf32>
    %100 = arith.mulf %98, %99 : vector<128x32xf32>
    %101 = vector.broadcast %78 : vector<1x32xf32> to vector<128x32xf32>
    %102 = arith.addf %100, %101 : vector<128x32xf32>
    %cst_47 = arith.constant 2.000000e-01 : f32
    %103 = vector.broadcast %cst_47 : f32 to vector<128x32xf32>
    %104 = arith.mulf %103, %102 : vector<128x32xf32>
    %105 = arith.maximumf %102, %104 : vector<128x32xf32>
    %c0_48 = arith.constant 0 : index
    %c0_49 = arith.constant 0 : index
    %106 = vector.load %arg14[%c0_48, %c0_49] : memref<1x32xf32, #tpu.memory_space<vmem>>, vector<1x32xf32>
    %107 = vector.broadcast %106 : vector<1x32xf32> to vector<128x32xf32>
    %108 = arith.mulf %105, %107 : vector<128x32xf32>
    %cst_50 = arith.constant dense<0.000000e+00> : vector<128xf32>
    %109 = vector.multi_reduction <add>, %108, %cst_50 [1] : vector<128x32xf32> to vector<128xf32>
    %110 = vector.shape_cast %109 : vector<128xf32> to vector<1x128xf32>
    %c0_51 = arith.constant 0 : index
    %c0_52 = arith.constant 0 : index
    %111 = memref.load %arg15[%c0_51, %c0_52] : memref<1x1xf32, #tpu.memory_space<smem>>
    %112 = vector.broadcast %111 : f32 to vector<1x128xf32>
    %113 = arith.addf %110, %112 : vector<1x128xf32>
    %114 = arith.negf %113 : vector<1x128xf32>
    %115 = math.exp %114 : vector<1x128xf32>
    %cst_53 = arith.constant 1.000000e+00 : f32
    %116 = vector.broadcast %cst_53 : f32 to vector<1x128xf32>
    %117 = arith.addf %116, %115 : vector<1x128xf32>
    %118 = arith.divf %116, %117 : vector<1x128xf32>
    %c0_54 = arith.constant 0 : index
    %c0_55 = arith.constant 0 : index
    %119 = vector.load %arg16[%c0_54, %c0_55] : memref<1x128xf32, #tpu.memory_space<vmem>>, vector<1x128xf32>
    tpu.vector_store %arg16[%c0_54, %c0_55], %118 {strides = array<i32>} : memref<1x128xf32, #tpu.memory_space<vmem>>, vector<1x128xf32>,
    return
  }
  func.func @transform_0(%arg0: i32) -> (i32, i32) {
    %c0_i32 = arith.constant 0 : i32
    %c0_i32_0 = arith.constant 0 : i32
    return %arg0, %c0_i32 : i32, i32
  }
  func.func @transform_1(%arg0: i32) -> (i32, i32) {
    %c0_i32 = arith.constant 0 : i32
    %c0_i32_0 = arith.constant 0 : i32
    %c0_i32_1 = arith.constant 0 : i32
    return %c0_i32, %c0_i32_0 : i32, i32
  }
  func.func @transform_2(%arg0: i32) -> (i32, i32) {
    %c0_i32 = arith.constant 0 : i32
    %c0_i32_0 = arith.constant 0 : i32
    %c0_i32_1 = arith.constant 0 : i32
    return %c0_i32, %c0_i32_0 : i32, i32
  }
  func.func @transform_3(%arg0: i32) -> (i32, i32) {
    %c0_i32 = arith.constant 0 : i32
    %c0_i32_0 = arith.constant 0 : i32
    %c0_i32_1 = arith.constant 0 : i32
    return %c0_i32, %c0_i32_0 : i32, i32
  }
  func.func @transform_4(%arg0: i32) -> (i32, i32) {
    %c0_i32 = arith.constant 0 : i32
    %c0_i32_0 = arith.constant 0 : i32
    %c0_i32_1 = arith.constant 0 : i32
    return %c0_i32, %c0_i32_0 : i32, i32
  }
  func.func @transform_5(%arg0: i32) -> (i32, i32) {
    %c0_i32 = arith.constant 0 : i32
    %c0_i32_0 = arith.constant 0 : i32
    %c0_i32_1 = arith.constant 0 : i32
    return %c0_i32, %c0_i32_0 : i32, i32
  }
  func.func @transform_6(%arg0: i32) -> (i32, i32) {
    %c0_i32 = arith.constant 0 : i32
    %c0_i32_0 = arith.constant 0 : i32
    %c0_i32_1 = arith.constant 0 : i32
    return %c0_i32, %c0_i32_0 : i32, i32
  }
  func.func @transform_7(%arg0: i32) -> (i32, i32) {
    %c0_i32 = arith.constant 0 : i32
    %c0_i32_0 = arith.constant 0 : i32
    %c0_i32_1 = arith.constant 0 : i32
    return %c0_i32, %c0_i32_0 : i32, i32
  }
  func.func @transform_8(%arg0: i32) -> (i32, i32) {
    %c0_i32 = arith.constant 0 : i32
    %c0_i32_0 = arith.constant 0 : i32
    %c0_i32_1 = arith.constant 0 : i32
    return %c0_i32, %c0_i32_0 : i32, i32
  }
  func.func @transform_9(%arg0: i32) -> (i32, i32) {
    %c0_i32 = arith.constant 0 : i32
    %c0_i32_0 = arith.constant 0 : i32
    %c0_i32_1 = arith.constant 0 : i32
    return %c0_i32, %c0_i32_0 : i32, i32
  }
  func.func @transform_10(%arg0: i32) -> (i32, i32) {
    %c0_i32 = arith.constant 0 : i32
    %c0_i32_0 = arith.constant 0 : i32
    %c0_i32_1 = arith.constant 0 : i32
    return %c0_i32, %c0_i32_0 : i32, i32
  }
  func.func @transform_11(%arg0: i32) -> (i32, i32) {
    %c0_i32 = arith.constant 0 : i32
    %c0_i32_0 = arith.constant 0 : i32
    %c0_i32_1 = arith.constant 0 : i32
    return %c0_i32, %c0_i32_0 : i32, i32
  }
  func.func @transform_12(%arg0: i32) -> (i32, i32) {
    %c0_i32 = arith.constant 0 : i32
    %c0_i32_0 = arith.constant 0 : i32
    %c0_i32_1 = arith.constant 0 : i32
    return %c0_i32, %c0_i32_0 : i32, i32
  }
  func.func @transform_13(%arg0: i32) -> (i32, i32) {
    %c0_i32 = arith.constant 0 : i32
    %c0_i32_0 = arith.constant 0 : i32
    %c0_i32_1 = arith.constant 0 : i32
    return %c0_i32, %c0_i32_0 : i32, i32
  }
  func.func @transform_14(%arg0: i32) -> (i32, i32) {
    %c0_i32 = arith.constant 0 : i32
    %c0_i32_0 = arith.constant 0 : i32
    %c0_i32_1 = arith.constant 0 : i32
    return %c0_i32, %c0_i32_0 : i32, i32
  }
  func.func @transform_15(%arg0: i32) -> (i32, i32) {
    %c0_i32 = arith.constant 0 : i32
    %c0_i32_0 = arith.constant 0 : i32
    return %c0_i32, %arg0 : i32, i32
  }
}

</mosaic_0001>

<bundles_post_ra>
// kernel: discriminator_forward.1
= control target key start
LH: loop header
LB: loop body
LE: loop exit
PB: predicated region body
PF: predicated region fallthrough
CT: control target
= control target key end

     0   :  { %s3903_s0 = inlined_call_operand.vmem [shape: f32[200,16], index: 0, kind: input, shape index: {}]   ;;  %s3904_s1 = inlined_call_operand.vmem [shape: bf16[16,32], index: 1, kind: input, shape index: {}]   ;;  %s3905_s2 = inlined_call_operand.vmem [shape: f32[1,32], index: 2, kind: input, shape index: {}]   ;;  %s3906_s3 = inlined_call_operand.vmem [shape: f32[1,32], index: 3, kind: input, shape index: {}]   ;;  %s3907_s4 = inlined_call_operand.vmem [shape: f32[1,32], index: 4, kind: input, shape index: {}]   ;;  %s3908_s5 = inlined_call_operand.vmem [shape: bf16[32,32], index: 5, kind: input, shape index: {}]   ;;  %s3909_s6 = inlined_call_operand.vmem [shape: f32[1,32], index: 6, kind: input, shape index: {}]   ;;  %s3910_s7 = inlined_call_operand.vmem [shape: f32[1,32], index: 7, kind: input, shape index: {}]   ;;  %s3911_s8 = inlined_call_operand.vmem [shape: f32[1,32], index: 8, kind: input, shape index: {}]   ;;  %s3912_s9 = inlined_call_operand.vmem [shape: bf16[32,32], index: 9, kind: input, shape index: {}]   ;;  %s3913_s10 = inlined_call_operand.vmem [shape: f32[1,32], index: 10, kind: input, shape index: {}]   ;;  %s3914_s11 = inlined_call_operand.vmem [shape: f32[1,32], index: 11, kind: input, shape index: {}]   ;;  %s3915_s12 = inlined_call_operand.vmem [shape: f32[1,32], index: 12, kind: input, shape index: {}]   ;;  %s3916_s13 = inlined_call_operand.vmem [shape: f32[1,32], index: 13, kind: input, shape index: {}]   ;;  %s3917_s14 = inlined_call_operand.<no memory space> [shape: f32[1,1], index: 14, kind: input, shape index: {}]   ;;  %s3918_s15 = inlined_call_operand.hbm [shape: f32[1,200], index: 15, kind: output, shape index: {}]  }
   0x1   :  { %3919 = sst [smem:[#allocation7_spill]] %s3903_s0 }
   0x2   :  { %3920 = sst [smem:[#allocation8_spill]] %s3904_s1 }
   0x3   :  { %3921 = sst [smem:[#allocation9_spill]] %s3905_s2 }
   0x4   :  { %20 = sst [smem:[#allocation2]] %s3917_s14 }
   0x5   :  { %21 = vsyncpa [#allocation4], 0 }
   0x6   :  { %23 = vsyncpa [#allocation4 + $0x1], 0  ;;  %s2871_s20 = smov 0   ;;  %s2873_s21 = smov 0  }
   0x7   :  { %s2875_s22 = smov 0   ;;  %s2877_s23 = smov 0  }
   0x8 LB: > { %s2365_s14 = sadd.s32 4294967295, %s2785_s23   ;;  %s2366_s24 = sadd.s32 4294967294, %s2785_s23   ;;  %s2785_s23 = sphi %s2877_s23, %s3932_s23   ;;  %s2781_s22 = sphi %s2875_s22, %s3931_s22   ;;  %s2777_s21 = sphi %s2873_s21, %s3930_s21   ;;  %s2773_s20 = sphi %s2871_s20, %s3929_s20  }
   0x9   : > { %s2894_s25 = sadd.s32 1, %s2785_s23   ;;  %s356_s26 = sadd.s32 1, %s2781_s22 }
   0xa   : > { %s353_s27 = ssub.s32 %s2785_s23, %s2894_s25  ;;  %p366_p0 = scmp.ne.s32.totalorder %s2781_s22, %s2777_s21 }
   0xb   : > { %p354_p1 = scmp.eq.s32.totalorder %s353_s27, 0  ;;  %p367_p2 = scmp.eq.s32.totalorder %s2365_s14, 1 }
   0xc   : > { %p372_p3 = scmp.ne.s32.totalorder %s2777_s21, %s2773_s20  ;;  %p373_p4 = scmp.eq.s32.totalorder %s2366_s24, 1 }
   0xd   : > { %s2904_s28 = scalar_select %p354_p1, %s2781_s22, %s356_s26  }
   0xe   : > { %p2906_p5 = por %p367_p2, %p366_p0  ;;  %p2910_p6 = por %p373_p4, %p372_p3 }
   0xf   : > { %3922 = sst [smem:[#allocation6_spill]] %s2904_s28  ;;  %p2369_p7 = scmp.ge.s32.totalorder %s2785_s23, 1 }
  0x10   : > { %p450_p8 = scmp.lt.s32.totalorder %s2785_s23, 3 }
  0x12   : > { %p451_p9 = pnand %p2369_p7, %p450_p8 }
  0x13   : > { %s3925_s1 = sld [smem:[#allocation8_spill]] (!%p451_p9)  ;;  %s2919_s18 = sshll.u32 (!%p451_p9), %s2365_s14, 4  ;;  %vm555_vm0 = vcmask (!%p451_p9), 130048   ;;  %vm679_vm1 = vcmask (!%p451_p9), 261120   ;;  %vm2196_vm2 = vcmask (!%p451_p9), 130112   ;;  %vm2203_vm3 = vcmask (!%p451_p9), 195712  }
  0x14   : > { %454 = sbr.rel (%p451_p9) target bundleno = 1494 (0x5d6), region = 80  ;;  %p506_p10 = scmp.lt.s32.totalorder (!%p451_p9), %s2919_s18, 24  ;;  %vm2210_vm4 = vcmask (!%p451_p9), 261312   ;;  %vm2217_vm5 = vcmask (!%p451_p9), 326912   ;;  %vm2224_vm6 = vcmask (!%p451_p9), 392512   ;;  %vm2231_vm7 = vcmask (!%p451_p9), 458112  }
  0x15   : > { %s3926_s0 = sld [smem:[#allocation7_spill]] (!%p451_p9)  ;;  %s3927_s2 = sld [smem:[#allocation9_spill]] (!%p451_p9)  ;;  %vm2238_vm8 = vcmask (!%p451_p9), 523712   ;;  %vm2245_vm9 = vcmask (!%p451_p9), 589312   ;;  %vm2252_vm10 = vcmask (!%p451_p9), 654912   ;;  %vm2259_vm11 = vcmask (!%p451_p9), 720512  }
  0x16   : > { %vm2266_vm12 = vcmask (!%p451_p9), 786112   ;;  %vm2273_vm13 = vcmask (!%p451_p9), 851712   ;;  %vm2280_vm14 = vcmask (!%p451_p9), 917312   ;;  %vm2287_vm15 = vcmask (!%p451_p9), 982912  }
  0x19   : > { %v2558_v0 = vld [vmem:[%s3925_s1] sm:$0xff] (!%p451_p9)  }
  0x1a   : > { %2459 = vmatprep.subr.bf16.mxu0 (!%p451_p9), %v2558_v0  ;;  %2517 = vmatprep.subr.bf16.mxu1 (!%p451_p9), %v2558_v0 }
  0x1b   : > { %2460 = vmatpush3.bf16.msra.mxu0 %v2558_v0  ;;  %2518 = vmatpush3.bf16.msra.mxu1 %v2558_v0  ;;  %s507_s19 = scalar_select %p506_p10, %s2919_s18, 24  ;;  %v2937_v25 = vld [vmem:[%s3927_s2] ss:$0 sm:$0xff] }
  0x1d   : > { %s2371_s24 = sshll.u32 %s507_s19, 3  ;;  %s2055_s19 = sld [smem:[#allocation2]] }
  0x1e   : > { %s509_s28 = scalar_lea.vmem %s3926_s0, %s2371_s24  ;;  %s499_s24 = sand.u32 1, %s2777_s21  }
  0x1f   : > { %v516_v1 = vld [vmem:[%s509_s28] sm:$0xff]  ;;  %v517_v2 = vld [vmem:[%s509_s28 + $0x8] sm:$0xff]  ;;  %v518_v6 = vld [vmem:[%s509_s28 + $0x10] sm:$0xff]  ;;  %s500_s26 = scalar_lea.vmem [#allocation3], %s499_s24  ;;  %s2299_s17 = scalar_lea.sflag [#allocation4], %s499_s24 }
  0x20   : > { %v524_v3 = vld [vmem:[%s509_s28 + $0x40] sm:$0xff]  ;;  %v532_v4 = vpack.c.bf16 %v517_v2, %v516_v1  ;;  %v525_v5 = vld [vmem:[%s509_s28 + $0x48] sm:$0xff]  ;;  %v519_v7 = vld [vmem:[%s509_s28 + $0x18] sm:$0xff]  ;;  %s2311_s27 = sshll.u32 %s500_s26, 4  ;;  %s2787_s0 = smov [#allocation3]   ;;  %s3863_s27 = int_to_ptr.vmem [resolvable:$true] %s2311_s27 }
  0x21   : > { %v536_v8 = vpack.c.bf16 %v525_v5, %v524_v3  ;;  %v533_v9 = vpack.c.bf16 %v519_v7, %v518_v6  ;;  %v526_v10 = vld [vmem:[%s509_s28 + $0x50] sm:$0xff]  ;;  %v527_v11 = vld [vmem:[%s509_s28 + $0x58] sm:$0xff]  ;;  %v520_v12 = vld [vmem:[%s509_s28 + $0x20] sm:$0xff]  ;;  %s2727_s1 = sshll.u32 %s2787_s0, 4  ;;  %s2728_s1 = int_to_ptr.vmem [resolvable:$false] %s2727_s1 }
  0x22   : > { %2461 = vmatprep.mubr.msk.bf16.mxu0 %vm555_vm0, %v532_v4  ;;  %v537_v13 = vpack.c.bf16 %v527_v11, %v526_v10  ;;  %v521_v14 = vld [vmem:[%s509_s28 + $0x28] sm:$0xff]  ;;  %v528_v16 = vld [vmem:[%s509_s28 + $0x60] sm:$0xff]  ;;  %v522_v18 = vld [vmem:[%s509_s28 + $0x30] sm:$0xff]  ;;  %s2729_s2 = scalar_lea.vmem %s2728_s1, 32  ;;  %p2730_p0 = scmp.lt.s32.totalorder %s3863_s27, %s2728_s1 }
  0x23   : > { %2469 = vmatprep.mubr.msk.bf16.mxu1 %vm555_vm0, %v536_v8  ;;  %2462 = vmatmul.mubr.msk.bf16.vlgmr.msra.gmra.mrb[0].mxu0 %vm555_vm0, %v533_v9  ;;  %v534_v15 = vpack.c.bf16 %v521_v14, %v520_v12  ;;  %v529_v17 = vld [vmem:[%s509_s28 + $0x68] sm:$0xff]  ;;  %v523_v19 = vld [vmem:[%s509_s28 + $0x38] sm:$0xff]  ;;  %v530_v21 = vld [vmem:[%s509_s28 + $0x70] sm:$0xff] }
  0x24   : > { %2470 = vmatmul.mubr.msk.bf16.vlgmr.msra.gmra.mrb[0].mxu1 %vm555_vm0, %v537_v13  ;;  %v538_v20 = vpack.c.bf16 %v529_v17, %v528_v16  ;;  %v531_v22 = vld [vmem:[%s509_s28 + $0x78] sm:$0xff]  ;;  %v535_v23 = vpack.c.bf16 %v523_v19, %v522_v18  ;;  %s3861_s28 = scalar_lea.hbm %s3918_s15, %s2919_s18 }
  0x25   : > { %2465 = vmatprep.mubr.msk.bf16.mxu0 %vm555_vm0, %v534_v15  ;;  %v539_v24 = vpack.c.bf16 %v531_v22, %v530_v21 }
  0x26   : > { %2473 = vmatprep.mubr.msk.bf16.mxu1 %vm555_vm0, %v538_v20 }
  0x2b   : > { %2466 = vmatmul.mubr.msk.bf16.gmra.mrb[4].mxu0 %vm555_vm0, %v535_v23 }
  0x2c   : > { %2474 = vmatmul.mubr.msk.bf16.gmra.mrb[4].mxu1 %vm555_vm0, %v539_v24  ;;  %vm2294_vm0 = vcmask 1048512  }
  0xf6   : > { %v2463_v26 = vpop.f32.mrb[0].mxu0 }
  0xf7   : > { %v2940_v27 = vadd.f32 %v2463_v26, %v2937_v25  ;;  %v2471_v28 = vpop.f32.mrb[0].mxu1  ;;  %v614_v29 = vpop.f32.mrb[1].mxu0 }
  0xf8   : > { %v2943_v30 = vadd.f32 %v2471_v28, %v2937_v25  ;;  %v646_v31 = vpop.f32.mrb[1].mxu1  ;;  %v2464_v32 = vpop.f32.mrb[2].mxu0  ;;  %v2951_v37 = vadd.f32 %v2937_v25, %v614_v29 }
  0xf9   : > { %v2946_v33 = vadd.f32 %v2464_v32, %v2937_v25  ;;  %v2472_v34 = vpop.f32.mrb[2].mxu1  ;;  %v617_v35 = vpop.f32.mrb[3].mxu0  ;;  %v686_v36 = vsel %vm679_vm1, %v2940_v27, 0.0  ;;  %v2961_v42 = vadd.f32 %v2937_v25, %v646_v31  ;;  %v730_v54 = vmul.f32 %v2940_v27, %v2940_v27 }
  0xfa   : > { %v649_v38 = vpop.f32.mrb[3].mxu1  ;;  %v710_v39 = vsel %vm679_vm1, %v2943_v30, 0.0  ;;  %687 = vadd.xlane.f32.xlu1 %v686_v36  ;;  %v2956_v40 = vadd.f32 %v2472_v34, %v2937_v25  ;;  %v680_v43 = vsel %vm679_vm1, %v2951_v37, 0.0  ;;  %v2977_v56 = vadd.f32 %v2937_v25, %v617_v35 }
  0xfb   : > { %711 = vadd.xlane.f32.xlu0 %v710_v39  ;;  %v689_v41 = vsel %vm679_vm1, %v2946_v33, 0.0  ;;  %v2968_v49 = vadd.f32 %v2937_v25, %v649_v38  ;;  %v704_v53 = vsel %vm679_vm1, %v2961_v42, 0.0  ;;  %v731_v58 = vmul.f32 %v2946_v33, %v2946_v33 }
  0xfc   : > { %v713_v50 = vsel %vm679_vm1, %v2956_v40, 0.0  ;;  %v750_v59 = vsel %vm679_vm1, %v730_v54, 0.0  ;;  %v729_v61 = vmul.f32 %v2977_v56, %v2977_v56  ;;  %v683_v62 = vsel %vm679_vm1, %v2977_v56, 0.0 }
  0xfd   : > { %v707_v57 = vsel %vm679_vm1, %v2968_v49, 0.0  ;;  %v753_v60 = vsel %vm679_vm1, %v731_v58, 0.0  ;;  %v728_v63 = vmul.f32 %v2951_v37, %v2951_v37  ;;  %v737_v1 = vmul.f32 %v2968_v49, %v2968_v49 }
  0xfe   : > { %690 = vadd.xlane.f32.xlu1 %v689_v41  ;;  %v2467_v44 = vpop.f32.mrb[4].mxu0  ;;  %v747_v0 = vsel %vm679_vm1, %v729_v61, 0.0  ;;  %v736_v3 = vmul.f32 %v2961_v42, %v2961_v42  ;;  %v739_v21 = vmul.f32 %v2956_v40, %v2956_v40  ;;  %v738_v23 = vmul.f32 %v2943_v30, %v2943_v30 }
  0xff   : > { %681 = vadd.xlane.f32.xlu0 %v680_v43  ;;  %v630_v45 = vpop.f32.mrb[5].mxu0  ;;  %v2965_v46 = vpop.f32.mrb[4].mxu1  ;;  %v744_v2 = vsel %vm679_vm1, %v728_v63, 0.0  ;;  %v771_v5 = vsel %vm679_vm1, %v737_v1, 0.0  ;;  %v3002_v6 = vadd.f32 %v2467_v44, %v2937_v25 }
 0x100   : > { %v2468_v47 = vpop.f32.mrb[6].mxu0  ;;  %v662_v48 = vpop.f32.mrb[5].mxu1  ;;  %v768_v7 = vsel %vm679_vm1, %v736_v3, 0.0  ;;  %v3011_v10 = vadd.f32 %v2937_v25, %v630_v45  ;;  %v777_v28 = vsel %vm679_vm1, %v739_v21, 0.0  ;;  %v774_v29 = vsel %vm679_vm1, %v738_v23, 0.0 }
 0x101   : > { %v633_v51 = vpop.f32.mrb[7].mxu0  ;;  %v2476_v52 = vpop.f32.mrb[6].mxu1  ;;  %v2998_v4 = vadd.f32 %v2468_v47, %v2937_v25  ;;  %v698_v11 = vsel %vm679_vm1, %v3002_v6, 0.0  ;;  %v734_v15 = vmul.f32 %v3002_v6, %v3002_v6  ;;  %v3039_v26 = vadd.f32 %v2937_v25, %v662_v48  ;;  %v2559_v48 = vld [vmem:[%s3908_s5] sm:$0xff]  }
 0x102   : > { %714 = vadd.xlane.f32.xlu1 %v713_v50  ;;  %v665_v55 = vpop.f32.mrb[7].mxu1  ;;  %v3006_v8 = vadd.f32 %v2937_v25, %v633_v51  ;;  %v692_v14 = vsel %vm679_vm1, %v3011_v10, 0.0  ;;  %v732_v19 = vmul.f32 %v3011_v10, %v3011_v10  ;;  %v3044_v31 = vadd.f32 %v2476_v52, %v2937_v25  ;;  %2477 = vmatprep.subr.bf16.mxu1 %v2559_v48  ;;  %v2560_v50 = vld [vmem:[%s3908_s5 + $0x8] sm:$0xff]  }
 0x103   : > { %705 = vadd.xlane.f32.xlu0 %v704_v53  ;;  %v701_v9 = vsel %vm679_vm1, %v2998_v4, 0.0  ;;  %v735_v13 = vmul.f32 %v2998_v4, %v2998_v4  ;;  %v762_v18 = vsel %vm679_vm1, %v734_v15, 0.0  ;;  %v3036_v24 = vadd.f32 %v2937_v25, %v665_v55  ;;  %2478 = vmatpush3.bf16.msra.mxu1 %v2559_v48 }
 0x104   : > { %v695_v12 = vsel %vm679_vm1, %v3006_v8, 0.0  ;;  %v733_v17 = vmul.f32 %v3006_v8, %v3006_v8  ;;  %v756_v22 = vsel %vm679_vm1, %v732_v19, 0.0  ;;  %v3050_v34 = vadd.f32 %v2965_v46, %v2937_v25  ;;  %2479 = vmatprep.subr.bf16.mxu1 %v2560_v50 }
 0x105   : > { %v765_v16 = vsel %vm679_vm1, %v735_v13, 0.0  ;;  %v719_v32 = vsel %vm679_vm1, %v3036_v24, 0.0  ;;  %v716_v35 = vsel %vm679_vm1, %v3039_v26, 0.0  ;;  %v725_v36 = vsel %vm679_vm1, %v3044_v31, 0.0 }
 0x106   : > { %708 = vadd.xlane.f32.xlu1 %v707_v57  ;;  %v759_v20 = vsel %vm679_vm1, %v733_v17, 0.0  ;;  %v741_v38 = vmul.f32 %v3036_v24, %v3036_v24  ;;  %v722_v39 = vsel %vm679_vm1, %v3050_v34, 0.0  ;;  %v740_v41 = vmul.f32 %v3039_v26, %v3039_v26 }
 0x107   : > { %751 = vadd.xlane.f32.xlu0 %v750_v59  ;;  %v743_v43 = vmul.f32 %v3044_v31, %v3044_v31  ;;  %v742_v45 = vmul.f32 %v3050_v34, %v3050_v34  ;;  %2480 = vmatpush3.bf16.msra.mxu1 %v2560_v50 }
 0x108   : > { %v783_v25 = vsel %vm679_vm1, %v741_v38, 0.0  ;;  %v780_v44 = vsel %vm679_vm1, %v740_v41, 0.0 }
 0x109   : > { %v789_v46 = vsel %vm679_vm1, %v743_v43, 0.0  ;;  %v786_v47 = vsel %vm679_vm1, %v742_v45, 0.0 }
 0x10a   : > { %754 = vadd.xlane.f32.xlu1 %v753_v60 }
 0x10b   : > { %684 = vadd.xlane.f32.xlu0 %v683_v62 }
 0x10e   : > { %748 = vadd.xlane.f32.xlu1 %v747_v0 }
 0x10f   : > { %745 = vadd.xlane.f32.xlu0 %v744_v2 }
 0x112   : > { %772 = vadd.xlane.f32.xlu1 %v771_v5 }
 0x113   : > { %769 = vadd.xlane.f32.xlu0 %v768_v7 }
 0x116   : > { %702 = vadd.xlane.f32.xlu1 %v701_v9 }
 0x117   : > { %699 = vadd.xlane.f32.xlu0 %v698_v11 }
 0x11a   : > { %696 = vadd.xlane.f32.xlu1 %v695_v12 }
 0x11b   : > { %693 = vadd.xlane.f32.xlu0 %v692_v14 }
 0x11e   : > { %766 = vadd.xlane.f32.xlu1 %v765_v16 }
 0x11f   : > { %763 = vadd.xlane.f32.xlu0 %v762_v18 }
 0x122   : > { %760 = vadd.xlane.f32.xlu1 %v759_v20 }
 0x123   : > { %757 = vadd.xlane.f32.xlu0 %v756_v22 }
 0x126   : > { %778 = vadd.xlane.f32.xlu1 %v777_v28 }
 0x127   : > { %775 = vadd.xlane.f32.xlu0 %v774_v29 }
 0x12a   : > { %720 = vadd.xlane.f32.xlu1 %v719_v32 }
 0x12b   : > { %717 = vadd.xlane.f32.xlu0 %v716_v35 }
 0x12e   : > { %726 = vadd.xlane.f32.xlu1 %v725_v36 }
 0x12f   : > { %723 = vadd.xlane.f32.xlu0 %v722_v39 }
 0x132   : > { %784 = vadd.xlane.f32.xlu1 %v783_v25 }
 0x133   : > { %781 = vadd.xlane.f32.xlu0 %v780_v44 }
 0x136   : > { %790 = vadd.xlane.f32.xlu1 %v789_v46 }
 0x137   : > { %787 = vadd.xlane.f32.xlu0 %v786_v47 }
 0x187   : > { %v688_v51 = vpop.xlane.xlu1 %687 }
 0x188   : > { %v712_v52 = vpop.xlane.xlu0 %711  ;;  %v794_v58 = vmul.f32 0.03125, %v688_v51 }
 0x18a   : > { %v826_v62 = vmul.f32 %v794_v58, %v794_v58 }
 0x18b   : > { %v691_v53 = vpop.xlane.xlu1 %690 }
 0x18c   : > { %v682_v54 = vpop.xlane.xlu0 %681  ;;  %v3078_v60 = vmul.f32 0.03125, %v691_v53 }
 0x18d   : > { %v3082_v7 = vmul.f32 0.03125, %v682_v54  ;;  %v3098_v54 = vmul.f32 0.03125, %v712_v52 }
 0x18e   : > { %v827_v2 = vmul.f32 %v3078_v60, %v3078_v60 }
 0x18f   : > { %v3076_v55 = vpop.xlane.xlu1 %714  ;;  %v824_v20 = vmul.f32 %v3082_v7, %v3082_v7 }
 0x190   : > { %v706_v57 = vpop.xlane.xlu0 %705 }
 0x191   : > { %v3092_v21 = vmul.f32 0.03125, %v706_v57  ;;  %v874_v57 = vsub.f32 %v2940_v27, %v794_v58  ;;  %v3114_v27 = vmul.f32 %v3098_v54, %v3098_v54  ;;  %v3117_v58 = vmul.f32 0.03125, %v3076_v55 }
 0x193   : > { %v709_v59 = vpop.xlane.xlu1 %708  ;;  %v832_v41 = vmul.f32 %v3092_v21, %v3092_v21 }
 0x194   : > { %v752_v61 = vpop.xlane.xlu0 %751  ;;  %v3086_v15 = vmul.f32 0.03125, %v709_v59 }
 0x195   : > { %v810_v63 = vmul.f32 0.03125, %v752_v61 }
 0x196   : > { %v833_v35 = vmul.f32 %v3086_v15, %v3086_v15 }
 0x197   : > { %v842_v0 = vsub.f32 %v810_v63, %v826_v62  ;;  %v755_v1 = vpop.xlane.xlu1 %754  ;;  %v3104_v63 = vld [vmem:[%s3906_s3] ss:$0 sm:$0xff] }
 0x198   : > { %v811_v3 = vmul.f32 0.03125, %v755_v1  ;;  %v685_v5 = vpop.xlane.xlu0 %684 }
 0x199   : > { %v858_v9 = vmax.f32 %v842_v0, 0.0  ;;  %v3084_v11 = vmul.f32 0.03125, %v685_v5  ;;  %v875_v5 = vsub.f32 %v2946_v33, %v3078_v60 }
 0x19a   : > { %v843_v12 = vsub.f32 %v811_v3, %v827_v2 }
 0x19b   : > { %v890_v13 = vadd.f32 1e-05, %v858_v9  ;;  %v749_v14 = vpop.xlane.xlu1 %748  ;;  %v825_v17 = vmul.f32 %v3084_v11, %v3084_v11  ;;  %v873_v33 = vsub.f32 %v2977_v56, %v3084_v11 }
 0x19c   : > { %v859_v16 = vmax.f32 %v843_v12, 0.0  ;;  %v809_v18 = vmul.f32 0.03125, %v749_v14  ;;  %v746_v19 = vpop.xlane.xlu0 %745  ;;  %v872_v12 = vsub.f32 %v2951_v37, %v3082_v7 }
 0x19d   : > { %2563 = vrsqrt.f32 %v890_v13  ;;  %v808_v22 = vmul.f32 0.03125, %v746_v19 }
 0x19e   : > { %v891_v23 = vadd.f32 1e-05, %v859_v16  ;;  %v841_v28 = vsub.f32 %v809_v18, %v825_v17  ;;  %v3127_v16 = vld [vmem:[%s3907_s4] ss:$0 sm:$0xff] }
 0x19f   : > { %v840_v29 = vsub.f32 %v808_v22, %v824_v20  ;;  %v773_v32 = vpop.xlane.xlu1 %772  ;;  %v835_v22 = vmul.f32 %v3117_v58, %v3117_v58 }
 0x1a0   : > { %2565 = vrsqrt.f32 %v891_v23  ;;  %v857_v36 = vmax.f32 %v841_v28, 0.0  ;;  %v817_v38 = vmul.f32 0.03125, %v773_v32  ;;  %v770_v39 = vpop.xlane.xlu0 %769  ;;  %v880_v23 = vsub.f32 %v2961_v42, %v3092_v21 }
 0x1a1   : > { %v856_v25 = vmax.f32 %v840_v29, 0.0  ;;  %v816_v43 = vmul.f32 0.03125, %v770_v39  ;;  %v881_v28 = vsub.f32 %v2968_v49, %v3086_v15 }
 0x1a2   : > { %v889_v44 = vadd.f32 1e-05, %v857_v36  ;;  %v849_v45 = vsub.f32 %v817_v38, %v833_v35 }
 0x1a3   : > { %v888_v46 = vadd.f32 1e-05, %v856_v25  ;;  %v848_v47 = vsub.f32 %v816_v43, %v832_v41  ;;  %v703_v48 = vpop.xlane.xlu1 %702 }
 0x1a4   : > { %2567 = vrsqrt.f32 %v889_v44  ;;  %v865_v50 = vmax.f32 %v849_v45, 0.0  ;;  %v700_v51 = vpop.xlane.xlu0 %699  ;;  %v3106_v2 = vmul.f32 0.03125, %v703_v48 }
 0x1a5   : > { %2569 = vrsqrt.f32 %v888_v46  ;;  %v864_v53 = vmax.f32 %v848_v47, 0.0  ;;  %v3110_v52 = vmul.f32 0.03125, %v700_v51 }
 0x1a6   : > { %v897_v1 = vadd.f32 1e-05, %v865_v50  ;;  %v831_v55 = vmul.f32 %v3106_v2, %v3106_v2 }
 0x1a7   : > { %v2564_v59 = vpop.eup %2563  ;;  %v896_v61 = vadd.f32 1e-05, %v864_v53  ;;  %v697_v62 = vpop.xlane.xlu1 %696  ;;  %v830_v19 = vmul.f32 %v3110_v52, %v3110_v52 }
 0x1a8   : > { %v922_v0 = vmul.f32 %v2564_v59, %v874_v57  ;;  %v694_v3 = vpop.xlane.xlu0 %693  ;;  %v3131_v17 = vmul.f32 0.03125, %v697_v62 }
 0x1a9   : > { %2571 = vrsqrt.f32 %v896_v61  ;;  %v3136_v56 = vmul.f32 0.03125, %v694_v3 }
 0x1aa   : > { %v2566_v9 = vpop.eup %2565  ;;  %v944_v13 = vmul.f32 %v3104_v63, %v922_v0  ;;  %2573 = vrsqrt.f32 %v897_v1  ;;  %v829_v25 = vmul.f32 %v3131_v17, %v3131_v17 }
 0x1ab   : > { %v923_v14 = vmul.f32 %v2566_v9, %v875_v5  ;;  %v767_v60 = vpop.xlane.xlu1 %766  ;;  %v828_v42 = vmul.f32 %v3136_v56, %v3136_v56 }
 0x1ac   : > { %v815_v18 = vmul.f32 0.03125, %v767_v60  ;;  %v764_v37 = vpop.xlane.xlu0 %763  ;;  %v966_v35 = vadd.f32 %v3127_v16, %v944_v13 }
 0x1ad   : > { %v945_v7 = vmul.f32 %v3104_v63, %v923_v14  ;;  %v814_v11 = vmul.f32 0.03125, %v764_v37 }
 0x1ae   : > { %v2568_v20 = vpop.eup %2567  ;;  %v847_v29 = vsub.f32 %v815_v18, %v831_v55  ;;  %v982_v62 = vmul.f32 0.2, %v966_v35 }
 0x1af   : > { %v2570_v32 = vpop.eup %2569  ;;  %v967_v36 = vadd.f32 %v3127_v16, %v945_v7  ;;  %v846_v38 = vsub.f32 %v814_v11, %v830_v19  ;;  %v761_v39 = vpop.xlane.xlu1 %760  ;;  %v921_v41 = vmul.f32 %v2568_v20, %v873_v33 }
 0x1b0   : > { %v863_v43 = vmax.f32 %v847_v29, 0.0  ;;  %v813_v44 = vmul.f32 0.03125, %v761_v39  ;;  %v758_v45 = vpop.xlane.xlu0 %757  ;;  %v920_v46 = vmul.f32 %v2570_v32, %v872_v12 }
 0x1b1   : > { %v862_v49 = vmax.f32 %v846_v38, 0.0  ;;  %v812_v15 = vmul.f32 0.03125, %v758_v45  ;;  %v943_v21 = vmul.f32 %v3104_v63, %v921_v41  ;;  %v983_v51 = vmul.f32 0.2, %v967_v36 }
 0x1b2   : > { %v895_v47 = vadd.f32 1e-05, %v863_v43  ;;  %v845_v48 = vsub.f32 %v813_v44, %v829_v25  ;;  %v942_v50 = vmul.f32 %v3104_v63, %v920_v46  ;;  %v998_v25 = vmax.f32 %v966_v35, %v982_v62 }
 0x1b3   : > { %v894_v53 = vadd.f32 1e-05, %v862_v49  ;;  %v844_v57 = vsub.f32 %v812_v15, %v828_v42  ;;  %v779_v59 = vpop.xlane.xlu1 %778  ;;  %v965_v61 = vadd.f32 %v3127_v16, %v943_v21  ;;  %v2572_v0 = vpop.eup %2571  ;;  %v999_v37 = vmax.f32 %v967_v36, %v983_v51 }
 0x1b4   : > { %2575 = vrsqrt.f32 %v895_v47  ;;  %v861_v1 = vmax.f32 %v845_v48, 0.0  ;;  %v819_v3 = vmul.f32 0.03125, %v779_v59  ;;  %v776_v5 = vpop.xlane.xlu0 %775  ;;  %v964_v9 = vadd.f32 %v3127_v16, %v942_v50  ;;  %v2574_v33 = vpop.eup %2573 }
 0x1b5   : > { %2577 = vrsqrt.f32 %v894_v53  ;;  %v860_v12 = vmax.f32 %v844_v57, 0.0  ;;  %v818_v13 = vmul.f32 0.03125, %v776_v5  ;;  %v981_v14 = vmul.f32 0.2, %v965_v61 }
 0x1b6   : > { %v893_v60 = vadd.f32 1e-05, %v861_v1  ;;  %v851_v55 = vsub.f32 %v819_v3, %v835_v22  ;;  %v980_v18 = vmul.f32 0.2, %v964_v9  ;;  %v928_v29 = vmul.f32 %v2572_v0, %v880_v23 }
 0x1b7   : > { %v892_v7 = vadd.f32 1e-05, %v860_v12  ;;  %v850_v19 = vsub.f32 %v818_v13, %v3114_v27  ;;  %v721_v11 = vpop.xlane.xlu1 %720  ;;  %v997_v20 = vmax.f32 %v965_v61, %v981_v14  ;;  %v929_v43 = vmul.f32 %v2574_v33, %v881_v28 }
 0x1b8   : > { %2579 = vrsqrt.f32 %v893_v60  ;;  %v867_v32 = vmax.f32 %v851_v55, 0.0  ;;  %v718_v38 = vpop.xlane.xlu0 %717  ;;  %v996_v39 = vmax.f32 %v964_v9, %v980_v18  ;;  %v1013_v42 = vpack.c.bf16 %v999_v37, %v998_v25 }
 0x1b9   : > { %2581 = vrsqrt.f32 %v892_v7  ;;  %v866_v41 = vmax.f32 %v850_v19, 0.0  ;;  %v950_v36 = vmul.f32 %v3104_v63, %v928_v29  ;;  %v3156_v27 = vmul.f32 0.03125, %v721_v11 }
 0x1ba   : > { %v899_v44 = vadd.f32 1e-05, %v867_v32  ;;  %v1012_v45 = vpack.c.bf16 %v997_v20, %v996_v39  ;;  %v951_v49 = vmul.f32 %v3104_v63, %v929_v43  ;;  %v882_v15 = vsub.f32 %v2943_v30, %v3098_v54 }
 0x1bb   : > { %v898_v46 = vadd.f32 1e-05, %v866_v41  ;;  %v727_v22 = vpop.xlane.xlu1 %726  ;;  %v879_v28 = vsub.f32 %v2998_v4, %v3106_v2  ;;  %v3164_v35 = vmul.f32 0.03125, %v718_v38  ;;  %v883_v47 = vsub.f32 %v2956_v40, %v3117_v58 }
 0x1bc   : > { %2583 = vrsqrt.f32 %v899_v44  ;;  %2481 = vmatprep.mubr.msk.bf16.mxu1 %vm679_vm1, %v1012_v45  ;;  %v724_v23 = vpop.xlane.xlu0 %723  ;;  %v878_v48 = vsub.f32 %v3002_v6, %v3110_v52  ;;  %v837_v50 = vmul.f32 %v3156_v27, %v3156_v27  ;;  %v3174_v30 = vadd.f32 %v3127_v16, %v950_v36 }
 0x1bd   : > { %2585 = vrsqrt.f32 %v898_v46  ;;  %2482 = vmatmul.mubr.msk.bf16.vlgmr.msra.gmra.mrb[8].mxu1 %vm679_vm1, %v1013_v42  ;;  %v836_v2 = vmul.f32 %v3164_v35, %v3164_v35  ;;  %v3178_v51 = vmul.f32 0.03125, %v727_v22  ;;  %v3181_v57 = vadd.f32 %v3127_v16, %v951_v49 }
 0x1be   : > { %v2576_v21 = vpop.eup %2575  ;;  %v877_v40 = vsub.f32 %v3006_v8, %v3131_v17  ;;  %v3185_v52 = vmul.f32 0.03125, %v724_v23  ;;  %v876_v61 = vsub.f32 %v3011_v10, %v3136_v56  ;;  %v988_v17 = vmul.f32 0.2, %v3174_v30 }
 0x1bf   : > { %v2578_v54 = vpop.eup %2577  ;;  %v927_v4 = vmul.f32 %v2576_v21, %v879_v28  ;;  %v785_v53 = vpop.xlane.xlu1 %784  ;;  %v839_v62 = vmul.f32 %v3178_v51, %v3178_v51  ;;  %v989_v56 = vmul.f32 0.2, %v3181_v57 }
 0x1c0   : > { %v926_v6 = vmul.f32 %v2578_v54, %v878_v48  ;;  %v821_v58 = vmul.f32 0.03125, %v785_v53  ;;  %v782_v59 = vpop.xlane.xlu0 %781  ;;  %v838_v5 = vmul.f32 %v3185_v52, %v3185_v52 }
 0x1c1   : > { %v820_v0 = vmul.f32 0.03125, %v782_v59  ;;  %v949_v1 = vmul.f32 %v3104_v63, %v927_v4 }
 0x1c2   : > { %v2580_v3 = vpop.eup %2579  ;;  %v853_v9 = vsub.f32 %v821_v58, %v837_v50  ;;  %v948_v8 = vmul.f32 %v3104_v63, %v926_v6  ;;  %v1005_v6 = vmax.f32 %v3181_v57, %v989_v56  ;;  %v884_v57 = vsub.f32 %v3039_v26, %v3164_v35 }
 0x1c3   : > { %v2582_v12 = vpop.eup %2581  ;;  %v925_v13 = vmul.f32 %v2580_v3, %v877_v40  ;;  %v852_v14 = vsub.f32 %v820_v0, %v836_v2  ;;  %v791_v33 = vpop.xlane.xlu1 %790  ;;  %v971_v10 = vadd.f32 %v3127_v16, %v949_v1 }
 0x1c4   : > { %v924_v60 = vmul.f32 %v2582_v12, %v876_v61  ;;  %v869_v55 = vmax.f32 %v853_v9, 0.0  ;;  %v823_v18 = vmul.f32 0.03125, %v791_v33  ;;  %v788_v37 = vpop.xlane.xlu0 %787  ;;  %v970_v7 = vadd.f32 %v3127_v16, %v948_v8 }
 0x1c5   : > { %v868_v19 = vmax.f32 %v852_v14, 0.0  ;;  %v822_v11 = vmul.f32 0.03125, %v788_v37  ;;  %v947_v20 = vmul.f32 %v3104_v63, %v925_v13  ;;  %v987_v29 = vmul.f32 0.2, %v971_v10 }
 0x1c6   : > { %v2584_v32 = vpop.eup %2583  ;;  %v901_v38 = vadd.f32 1e-05, %v869_v55  ;;  %v855_v39 = vsub.f32 %v823_v18, %v839_v62  ;;  %v946_v41 = vmul.f32 %v3104_v63, %v924_v60  ;;  %v986_v25 = vmul.f32 0.2, %v970_v7 }
 0x1c7   : > { %v2586_v43 = vpop.eup %2585  ;;  %v931_v44 = vmul.f32 %v2584_v32, %v883_v47  ;;  %v900_v45 = vadd.f32 1e-05, %v868_v19  ;;  %v854_v46 = vsub.f32 %v822_v11, %v838_v5  ;;  %v969_v22 = vadd.f32 %v3127_v16, %v947_v20 }
 0x1c8   : > { %v930_v42 = vmul.f32 %v2586_v43, %v882_v15  ;;  %2587 = vrsqrt.f32 %v901_v38  ;;  %v871_v36 = vmax.f32 %v855_v39, 0.0  ;;  %v968_v23 = vadd.f32 %v3127_v16, %v946_v41 }
 0x1c9   : > { %2589 = vrsqrt.f32 %v900_v45  ;;  %v870_v49 = vmax.f32 %v854_v46, 0.0  ;;  %v985_v28 = vmul.f32 0.2, %v969_v22  ;;  %v1002_v50 = vmax.f32 %v970_v7, %v986_v25 }
 0x1ca   : > { %v903_v21 = vadd.f32 1e-05, %v871_v36  ;;  %v984_v48 = vmul.f32 0.2, %v968_v23  ;;  %v1003_v54 = vmax.f32 %v971_v10, %v987_v29  ;;  %v952_v47 = vmul.f32 %v3104_v63, %v930_v42 }
 0x1cb   : > { %v902_v4 = vadd.f32 1e-05, %v870_v49  ;;  %v1001_v2 = vmax.f32 %v969_v22, %v985_v28  ;;  %v953_v53 = vmul.f32 %v3104_v63, %v931_v44  ;;  %v1004_v15 = vmax.f32 %v3174_v30, %v988_v17 }
 0x1cc   : > { %2591 = vrsqrt.f32 %v903_v21  ;;  %v1000_v40 = vmax.f32 %v968_v23, %v984_v48  ;;  %v974_v58 = vadd.f32 %v3127_v16, %v952_v47  ;;  %v1015_v62 = vpack.c.bf16 %v1003_v54, %v1002_v50 }
 0x1cd   : > { %2593 = vrsqrt.f32 %v902_v4  ;;  %v975_v59 = vadd.f32 %v3127_v16, %v953_v53  ;;  %v1016_v3 = vpack.c.bf16 %v1005_v6, %v1004_v15  ;;  %v885_v5 = vsub.f32 %v3036_v24, %v3156_v27 }
 0x1ce   : > { %v1014_v61 = vpack.c.bf16 %v1001_v2, %v1000_v40  ;;  %v990_v0 = vmul.f32 0.2, %v974_v58  ;;  %v887_v14 = vsub.f32 %v3044_v31, %v3178_v51  ;;  %v886_v24 = vsub.f32 %v3050_v34, %v3185_v52 }
 0x1cf   : > { %v991_v1 = vmul.f32 0.2, %v975_v59 }
 0x1d0   : > { %2485 = vmatprep.mubr.msk.bf16.mxu1 %vm679_vm1, %v1014_v61  ;;  %v1006_v17 = vmax.f32 %v974_v58, %v990_v0 }
 0x1d1   : > { %2486 = vmatmul.mubr.msk.bf16.gmra.mrb[12].mxu1 %vm679_vm1, %v1015_v62  ;;  %v1007_v12 = vmax.f32 %v975_v59, %v991_v1 }
 0x1d2   : > { %v2588_v30 = vpop.eup %2587  ;;  %2489 = vmatprep.mubr.msk.bf16.mxu1 %vm679_vm1, %v1016_v3 }
 0x1d3   : > { %v2590_v9 = vpop.eup %2589  ;;  %v933_v8 = vmul.f32 %v2588_v30, %v885_v5  ;;  %v1017_v35 = vpack.c.bf16 %v1007_v12, %v1006_v17 }
 0x1d4   : > { %v932_v13 = vmul.f32 %v2590_v9, %v884_v57 }
 0x1d5   : > { %v955_v33 = vmul.f32 %v3104_v63, %v933_v8 }
 0x1d6   : > { %v2592_v10 = vpop.eup %2591  ;;  %v954_v27 = vmul.f32 %v3104_v63, %v932_v13 }
 0x1d7   : > { %v2594_v56 = vpop.eup %2593  ;;  %v935_v26 = vmul.f32 %v2592_v10, %v887_v14  ;;  %v977_v60 = vadd.f32 %v3127_v16, %v955_v33 }
 0x1d8   : > { %v934_v55 = vmul.f32 %v2594_v56, %v886_v24  ;;  %v976_v18 = vadd.f32 %v3127_v16, %v954_v27 }
 0x1d9   : > { %2490 = vmatmul.mubr.msk.bf16.gmra.mrb[16].mxu1 %vm679_vm1, %v1017_v35  ;;  %v993_v37 = vmul.f32 0.2, %v977_v60  ;;  %v957_v31 = vmul.f32 %v3104_v63, %v935_v26 }
 0x1da   : > { %v992_v51 = vmul.f32 0.2, %v976_v18  ;;  %v956_v7 = vmul.f32 %v3104_v63, %v934_v55  ;;  %v3234_v63 = vld [vmem:[%s3909_s6] ss:$0 sm:$0xff] }
 0x1db   : > { %v1009_v19 = vmax.f32 %v977_v60, %v993_v37  ;;  %v979_v34 = vadd.f32 %v3127_v16, %v957_v31 }
 0x1dc   : > { %v1008_v52 = vmax.f32 %v976_v18, %v992_v51  ;;  %v978_v11 = vadd.f32 %v3127_v16, %v956_v7 }
 0x1dd   : > { %v995_v20 = vmul.f32 0.2, %v979_v34 }
 0x1de   : > { %v1018_v29 = vpack.c.bf16 %v1009_v19, %v1008_v52  ;;  %v994_v32 = vmul.f32 0.2, %v978_v11 }
 0x1df   : > { %v1011_v38 = vmax.f32 %v979_v34, %v995_v20 }
 0x1e0   : > { %2493 = vmatprep.mubr.msk.bf16.mxu1 %vm679_vm1, %v1018_v29  ;;  %v1010_v39 = vmax.f32 %v978_v11, %v994_v32 }
 0x1e2   : > { %v1019_v41 = vpack.c.bf16 %v1011_v38, %v1010_v39 }
 0x1e4   : > { %2494 = vmatmul.mubr.msk.bf16.gmra.mrb[20].mxu1 %vm679_vm1, %v1019_v41 }
 0x290   : > { %v2483_v25 = vpop.f32.mrb[8].mxu1 }
 0x291   : > { %v3237_v43 = vadd.f32 %v2483_v25, %v3234_v63  ;;  %v1101_v16 = vpop.f32.mrb[9].mxu1 }
 0x292   : > { %v2484_v44 = vpop.f32.mrb[10].mxu1  ;;  %v3240_v45 = vadd.f32 %v3234_v63, %v1101_v16 }
 0x293   : > { %v3243_v46 = vadd.f32 %v2484_v44, %v3234_v63  ;;  %v1104_v22 = vpop.f32.mrb[11].mxu1  ;;  %v1172_v42 = vsel %vm679_vm1, %v3237_v43, 0.0  ;;  %v1216_v28 = vmul.f32 %v3237_v43, %v3237_v43 }
 0x294   : > { %1173 = vadd.xlane.f32.xlu0 %v1172_v42  ;;  %v3248_v36 = vadd.f32 %v3234_v63, %v1104_v22  ;;  %v1166_v49 = vsel %vm679_vm1, %v3240_v45, 0.0  ;;  %v1214_v54 = vmul.f32 %v3240_v45, %v3240_v45 }
 0x295   : > { %v1175_v23 = vsel %vm679_vm1, %v3243_v46, 0.0  ;;  %v1217_v48 = vmul.f32 %v3243_v46, %v3243_v46  ;;  %v1236_v50 = vsel %vm679_vm1, %v1216_v28, 0.0 }
 0x296   : > { %1176 = vadd.xlane.f32.xlu1 %v1175_v23  ;;  %v1169_v21 = vsel %vm679_vm1, %v3248_v36, 0.0  ;;  %v1215_v2 = vmul.f32 %v3248_v36, %v3248_v36  ;;  %v1230_v47 = vsel %vm679_vm1, %v1214_v54, 0.0 }
 0x297   : > { %v1239_v4 = vsel %vm679_vm1, %v1217_v48, 0.0 }
 0x298   : > { %1167 = vadd.xlane.f32.xlu0 %v1166_v49  ;;  %v1233_v53 = vsel %vm679_vm1, %v1215_v2, 0.0 }
 0x29a   : > { %1170 = vadd.xlane.f32.xlu1 %v1169_v21 }
 0x29c   : > { %1237 = vadd.xlane.f32.xlu0 %v1236_v50 }
 0x29e   : > { %1240 = vadd.xlane.f32.xlu1 %v1239_v4 }
 0x2a0   : > { %1231 = vadd.xlane.f32.xlu0 %v1230_v47  ;;  %v2561_v47 = vld [vmem:[%s3912_s9] sm:$0xff]  }
 0x2a1   : > { %2497 = vmatprep.subr.bf16.mxu0 %v2561_v47 }
 0x2a2   : > { %1234 = vadd.xlane.f32.xlu1 %v1233_v53  ;;  %2498 = vmatpush3.bf16.msra.mxu0 %v2561_v47 }
 0x2a4   : > { %v2487_v40 = vpop.f32.mrb[12].mxu1 }
 0x2a5   : > { %v3269_v15 = vadd.f32 %v2487_v40, %v3234_v63  ;;  %v1117_v6 = vpop.f32.mrb[13].mxu1 }
 0x2a6   : > { %v2488_v58 = vpop.f32.mrb[14].mxu1  ;;  %v3272_v59 = vadd.f32 %v3234_v63, %v1117_v6  ;;  %v2562_v6 = vld [vmem:[%s3912_s9 + $0x8] sm:$0xff]  }
 0x2a7   : > { %v3275_v61 = vadd.f32 %v2488_v58, %v3234_v63  ;;  %v1120_v62 = vpop.f32.mrb[15].mxu1  ;;  %v1184_v0 = vsel %vm679_vm1, %v3269_v15, 0.0  ;;  %v1220_v30 = vmul.f32 %v3269_v15, %v3269_v15  ;;  %2499 = vmatprep.subr.bf16.mxu0 %v2562_v6 }
 0x2a8   : > { %1185 = vadd.xlane.f32.xlu0 %v1184_v0  ;;  %v3280_v1 = vadd.f32 %v3234_v63, %v1120_v62  ;;  %v1178_v5 = vsel %vm679_vm1, %v3272_v59, 0.0  ;;  %v1218_v33 = vmul.f32 %v3272_v59, %v3272_v59  ;;  %2500 = vmatpush3.bf16.msra.mxu0 %v2562_v6 }
 0x2a9   : > { %v1187_v3 = vsel %vm679_vm1, %v3275_v61, 0.0  ;;  %v1221_v17 = vmul.f32 %v3275_v61, %v3275_v61  ;;  %v1248_v14 = vsel %vm679_vm1, %v1220_v30, 0.0 }
 0x2aa   : > { %1188 = vadd.xlane.f32.xlu1 %v1187_v3  ;;  %v1181_v8 = vsel %vm679_vm1, %v3280_v1, 0.0  ;;  %v1219_v24 = vmul.f32 %v3280_v1, %v3280_v1  ;;  %v1242_v56 = vsel %vm679_vm1, %v1218_v33, 0.0 }
 0x2ab   : > { %v1251_v10 = vsel %vm679_vm1, %v1221_v17, 0.0 }
 0x2ac   : > { %1179 = vadd.xlane.f32.xlu0 %v1178_v5  ;;  %v2491_v57 = vpop.f32.mrb[16].mxu1  ;;  %v1245_v35 = vsel %vm679_vm1, %v1219_v24, 0.0 }
 0x2ad   : > { %v1133_v9 = vpop.f32.mrb[17].mxu1  ;;  %v3299_v27 = vadd.f32 %v2491_v57, %v3234_v63 }
 0x2ae   : > { %1182 = vadd.xlane.f32.xlu1 %v1181_v8  ;;  %v2492_v12 = vpop.f32.mrb[18].mxu1  ;;  %v3307_v60 = vadd.f32 %v3234_v63, %v1133_v9 }
 0x2af   : > { %v1136_v13 = vpop.f32.mrb[19].mxu1  ;;  %v3303_v26 = vadd.f32 %v2492_v12, %v3234_v63  ;;  %v1196_v18 = vsel %vm679_vm1, %v3299_v27, 0.0  ;;  %v1224_v52 = vmul.f32 %v3299_v27, %v3299_v27 }
 0x2b0   : > { %1249 = vadd.xlane.f32.xlu0 %v1248_v14  ;;  %v3312_v31 = vadd.f32 %v3234_v63, %v1136_v13  ;;  %v1190_v34 = vsel %vm679_vm1, %v3307_v60, 0.0  ;;  %v1222_v32 = vmul.f32 %v3307_v60, %v3307_v60 }
 0x2b1   : > { %v1199_v7 = vsel %vm679_vm1, %v3303_v26, 0.0  ;;  %v1225_v20 = vmul.f32 %v3303_v26, %v3303_v26  ;;  %v1260_v29 = vsel %vm679_vm1, %v1224_v52, 0.0 }
 0x2b2   : > { %1252 = vadd.xlane.f32.xlu1 %v1251_v10  ;;  %v1193_v11 = vsel %vm679_vm1, %v3312_v31, 0.0  ;;  %v1223_v39 = vmul.f32 %v3312_v31, %v3312_v31  ;;  %v1254_v25 = vsel %vm679_vm1, %v1222_v32, 0.0 }
 0x2b3   : > { %v1263_v38 = vsel %vm679_vm1, %v1225_v20, 0.0 }
 0x2b4   : > { %1243 = vadd.xlane.f32.xlu0 %v1242_v56  ;;  %v1257_v44 = vsel %vm679_vm1, %v1223_v39, 0.0 }
 0x2b6   : > { %1246 = vadd.xlane.f32.xlu1 %v1245_v35 }
 0x2b7   : > { %v2495_v55 = vpop.f32.mrb[20].mxu1 }
 0x2b8   : > { %1197 = vadd.xlane.f32.xlu0 %v1196_v18  ;;  %v1149_v37 = vpop.f32.mrb[21].mxu1  ;;  %v3331_v41 = vadd.f32 %v2495_v55, %v3234_v63 }
 0x2b9   : > { %v2496_v51 = vpop.f32.mrb[22].mxu1  ;;  %v3339_v22 = vadd.f32 %v3234_v63, %v1149_v37 }
 0x2ba   : > { %1200 = vadd.xlane.f32.xlu1 %v1199_v7  ;;  %v1152_v19 = vpop.f32.mrb[23].mxu1  ;;  %v3335_v16 = vadd.f32 %v2496_v51, %v3234_v63  ;;  %v1208_v42 = vsel %vm679_vm1, %v3331_v41, 0.0  ;;  %v1228_v54 = vmul.f32 %v3331_v41, %v3331_v41 }
 0x2bb   : > { %v3344_v23 = vadd.f32 %v3234_v63, %v1152_v19  ;;  %v1202_v28 = vsel %vm679_vm1, %v3339_v22, 0.0  ;;  %v1226_v21 = vmul.f32 %v3339_v22, %v3339_v22 }
 0x2bc   : > { %1191 = vadd.xlane.f32.xlu0 %v1190_v34  ;;  %v1211_v49 = vsel %vm679_vm1, %v3335_v16, 0.0  ;;  %v1229_v2 = vmul.f32 %v3335_v16, %v3335_v16  ;;  %v1272_v53 = vsel %vm679_vm1, %v1228_v54, 0.0 }
 0x2bd   : > { %v1205_v48 = vsel %vm679_vm1, %v3344_v23, 0.0  ;;  %v1227_v50 = vmul.f32 %v3344_v23, %v3344_v23  ;;  %v1266_v63 = vsel %vm679_vm1, %v1226_v21, 0.0 }
 0x2be   : > { %1194 = vadd.xlane.f32.xlu1 %v1193_v11  ;;  %v1275_v40 = vsel %vm679_vm1, %v1229_v2, 0.0 }
 0x2bf   : > { %v1269_v4 = vsel %vm679_vm1, %v1227_v50, 0.0  ;;  %v3380_v50 = vld [vmem:[%s3910_s7] ss:$0 sm:$0xff] }
 0x2c0   : > { %1261 = vadd.xlane.f32.xlu0 %v1260_v29 }
 0x2c2   : > { %1264 = vadd.xlane.f32.xlu1 %v1263_v38 }
 0x2c4   : > { %1255 = vadd.xlane.f32.xlu0 %v1254_v25 }
 0x2c6   : > { %1258 = vadd.xlane.f32.xlu1 %v1257_v44 }
 0x2c8   : > { %1209 = vadd.xlane.f32.xlu0 %v1208_v42 }
 0x2ca   : > { %1212 = vadd.xlane.f32.xlu1 %v1211_v49 }
 0x2cc   : > { %1203 = vadd.xlane.f32.xlu0 %v1202_v28 }
 0x2ce   : > { %1206 = vadd.xlane.f32.xlu1 %v1205_v48 }
 0x2d0   : > { %1267 = vadd.xlane.f32.xlu0 %v1266_v63 }
 0x2d2   : > { %1270 = vadd.xlane.f32.xlu1 %v1269_v4 }
 0x2d4   : > { %1273 = vadd.xlane.f32.xlu0 %v1272_v53 }
 0x2d6   : > { %1276 = vadd.xlane.f32.xlu1 %v1275_v40 }
 0x321   : > { %v1174_v58 = vpop.xlane.xlu0 %1173 }
 0x322   : > { %v1280_v3 = vmul.f32 0.03125, %v1174_v58 }
 0x323   : > { %v1177_v62 = vpop.xlane.xlu1 %1176 }
 0x324   : > { %v1281_v30 = vmul.f32 0.03125, %v1177_v62  ;;  %v1312_v9 = vmul.f32 %v1280_v3, %v1280_v3  ;;  %v1360_v28 = vsub.f32 %v3237_v43, %v1280_v3 }
 0x325   : > { %v1168_v0 = vpop.xlane.xlu0 %1167 }
 0x326   : > { %v1278_v8 = vmul.f32 0.03125, %v1168_v0  ;;  %v1313_v14 = vmul.f32 %v1281_v30, %v1281_v30  ;;  %v1361_v54 = vsub.f32 %v3243_v46, %v1281_v30  ;;  %v3396_v46 = vld [vmem:[%s3911_s8] ss:$0 sm:$0xff] }
 0x327   : > { %v1171_v5 = vpop.xlane.xlu1 %1170 }
 0x328   : > { %v3370_v12 = vmul.f32 0.03125, %v1171_v5  ;;  %v1310_v56 = vmul.f32 %v1278_v8, %v1278_v8  ;;  %v1358_v58 = vsub.f32 %v3240_v45, %v1278_v8 }
 0x329   : > { %v1238_v57 = vpop.xlane.xlu0 %1237 }
 0x32a   : > { %v1296_v17 = vmul.f32 0.03125, %v1238_v57  ;;  %v1311_v37 = vmul.f32 %v3370_v12, %v3370_v12 }
 0x32b   : > { %v1241_v13 = vpop.xlane.xlu1 %1240 }
 0x32c   : > { %v1328_v33 = vsub.f32 %v1296_v17, %v1312_v9  ;;  %v1297_v10 = vmul.f32 0.03125, %v1241_v13  ;;  %v1359_v17 = vsub.f32 %v3248_v36, %v3370_v12 }
 0x32d   : > { %v1232_v24 = vpop.xlane.xlu0 %1231 }
 0x32e   : > { %v1344_v35 = vmax.f32 %v1328_v33, 0.0  ;;  %v1329_v55 = vsub.f32 %v1297_v10, %v1313_v14  ;;  %v1294_v18 = vmul.f32 0.03125, %v1232_v24 }
 0x32f   : > { %v1235_v51 = vpop.xlane.xlu1 %1234 }
 0x330   : > { %v1376_v7 = vadd.f32 1e-05, %v1344_v35  ;;  %v1345_v19 = vmax.f32 %v1329_v55, 0.0  ;;  %v1326_v34 = vsub.f32 %v1294_v18, %v1310_v56  ;;  %v1295_v52 = vmul.f32 0.03125, %v1235_v51 }
 0x332   : > { %2595 = vrsqrt.f32 %v1376_v7  ;;  %v1377_v11 = vadd.f32 1e-05, %v1345_v19  ;;  %v1342_v20 = vmax.f32 %v1326_v34, 0.0  ;;  %v1327_v29 = vsub.f32 %v1295_v52, %v1311_v37 }
 0x334   : > { %2597 = vrsqrt.f32 %v1377_v11  ;;  %v1374_v32 = vadd.f32 1e-05, %v1342_v20  ;;  %v1343_v38 = vmax.f32 %v1327_v29, 0.0 }
 0x335   : > { %v1186_v39 = vpop.xlane.xlu0 %1185 }
 0x336   : > { %2599 = vrsqrt.f32 %v1374_v32  ;;  %v1375_v25 = vadd.f32 1e-05, %v1343_v38  ;;  %v3374_v49 = vmul.f32 0.03125, %v1186_v39 }
 0x337   : > { %v1189_v44 = vpop.xlane.xlu1 %1188 }
 0x338   : > { %2601 = vrsqrt.f32 %v1375_v25  ;;  %v3382_v63 = vmul.f32 0.03125, %v1189_v44  ;;  %v1316_v40 = vmul.f32 %v3374_v49, %v3374_v49 }
 0x339   : > { %v1180_v42 = vpop.xlane.xlu0 %1179 }
 0x33a   : > { %v3385_v2 = vmul.f32 0.03125, %v1180_v42  ;;  %v1317_v30 = vmul.f32 %v3382_v63, %v3382_v63 }
 0x33b   : > { %v1183_v21 = vpop.xlane.xlu1 %1182 }
 0x33c   : > { %v2596_v48 = vpop.eup %2595  ;;  %v3389_v43 = vmul.f32 0.03125, %v1183_v21  ;;  %v1314_v13 = vmul.f32 %v3385_v2, %v3385_v2 }
 0x33d   : > { %v1408_v4 = vmul.f32 %v2596_v48, %v1360_v28  ;;  %v1250_v47 = vpop.xlane.xlu0 %1249 }
 0x33e   : > { %v2598_v53 = vpop.eup %2597  ;;  %v1300_v6 = vmul.f32 0.03125, %v1250_v47  ;;  %v1315_v10 = vmul.f32 %v3389_v43, %v3389_v43 }
 0x33f   : > { %v1430_v62 = vmul.f32 %v3380_v50, %v1408_v4  ;;  %v1409_v0 = vmul.f32 %v2598_v53, %v1361_v54  ;;  %v1253_v3 = vpop.xlane.xlu1 %1252 }
 0x340   : > { %v2600_v5 = vpop.eup %2599  ;;  %v1332_v57 = vsub.f32 %v1300_v6, %v1316_v40  ;;  %v1301_v9 = vmul.f32 0.03125, %v1253_v3 }
 0x341   : > { %v1431_v45 = vmul.f32 %v3380_v50, %v1409_v0  ;;  %v1406_v8 = vmul.f32 %v2600_v5, %v1358_v58  ;;  %v1244_v14 = vpop.xlane.xlu0 %1243  ;;  %v1452_v55 = vadd.f32 %v3396_v46, %v1430_v62 }
 0x342   : > { %v2602_v33 = vpop.eup %2601  ;;  %v1348_v24 = vmax.f32 %v1332_v57, 0.0  ;;  %v1333_v56 = vsub.f32 %v1301_v9, %v1317_v30  ;;  %v1298_v35 = vmul.f32 0.03125, %v1244_v14 }
 0x343   : > { %v1453_v18 = vadd.f32 %v3396_v46, %v1431_v45  ;;  %v1407_v37 = vmul.f32 %v2602_v33, %v1359_v17  ;;  %v1247_v36 = vpop.xlane.xlu1 %1246  ;;  %v1428_v12 = vmul.f32 %v3380_v50, %v1406_v8  ;;  %v1468_v28 = vmul.f32 0.2, %v1452_v55 }
 0x344   : > { %v1380_v51 = vadd.f32 1e-05, %v1348_v24  ;;  %v1349_v7 = vmax.f32 %v1333_v56, 0.0  ;;  %v1330_v19 = vsub.f32 %v1298_v35, %v1314_v13  ;;  %v1299_v34 = vmul.f32 0.03125, %v1247_v36 }
 0x345   : > { %v1469_v52 = vmul.f32 0.2, %v1453_v18  ;;  %v1198_v11 = vpop.xlane.xlu0 %1197  ;;  %v1429_v20 = vmul.f32 %v3380_v50, %v1407_v37  ;;  %v1450_v29 = vadd.f32 %v3396_v46, %v1428_v12  ;;  %v1484_v3 = vmax.f32 %v1452_v55, %v1468_v28 }
 0x346   : > { %2603 = vrsqrt.f32 %v1380_v51  ;;  %v1381_v32 = vadd.f32 1e-05, %v1349_v7  ;;  %v1346_v38 = vmax.f32 %v1330_v19, 0.0  ;;  %v1331_v39 = vsub.f32 %v1299_v34, %v1315_v10 }
 0x347   : > { %v1201_v25 = vpop.xlane.xlu1 %1200  ;;  %v1451_v44 = vadd.f32 %v3396_v46, %v1429_v20  ;;  %v1466_v42 = vmul.f32 0.2, %v1450_v29  ;;  %v3413_v53 = vmul.f32 0.03125, %v1198_v11  ;;  %v1485_v40 = vmax.f32 %v1453_v18, %v1469_v52 }
 0x348   : > { %2605 = vrsqrt.f32 %v1381_v32  ;;  %v1378_v21 = vadd.f32 1e-05, %v1346_v38  ;;  %v1347_v48 = vmax.f32 %v1331_v39, 0.0  ;;  %v3415_v0 = vmul.f32 0.03125, %v1201_v25 }
 0x349   : > { %v1192_v54 = vpop.xlane.xlu0 %1191  ;;  %v1467_v4 = vmul.f32 0.2, %v1451_v44  ;;  %v1482_v58 = vmax.f32 %v1450_v29, %v1466_v42  ;;  %v1320_v57 = vmul.f32 %v3413_v53, %v3413_v53  ;;  %v1499_v45 = vpack.c.bf16 %v1485_v40, %v1484_v3 }
 0x34a   : > { %2607 = vrsqrt.f32 %v1378_v21  ;;  %v1379_v47 = vadd.f32 1e-05, %v1347_v48  ;;  %v3419_v9 = vmul.f32 0.03125, %v1192_v54  ;;  %v1364_v8 = vsub.f32 %v3269_v15, %v3374_v49 }
 0x34b   : > { %v1195_v6 = vpop.xlane.xlu1 %1194  ;;  %v1483_v62 = vmax.f32 %v1451_v44, %v1467_v4  ;;  %v1321_v10 = vmul.f32 %v3415_v0, %v3415_v0  ;;  %v1365_v35 = vsub.f32 %v3275_v61, %v3382_v63  ;;  %v1362_v51 = vsub.f32 %v3272_v59, %v3385_v2 }
 0x34c   : > { %2609 = vrsqrt.f32 %v1379_v47  ;;  %v3423_v13 = vmul.f32 0.03125, %v1195_v6  ;;  %v1318_v15 = vmul.f32 %v3419_v9, %v3419_v9  ;;  %v1363_v32 = vsub.f32 %v3280_v1, %v3389_v43 }
 0x34d   : > { %v1262_v5 = vpop.xlane.xlu0 %1261  ;;  %v1498_v30 = vpack.c.bf16 %v1483_v62, %v1482_v58 }
 0x34e   : > { %v1304_v17 = vmul.f32 0.03125, %v1262_v5  ;;  %v1319_v19 = vmul.f32 %v3423_v13, %v3423_v13 }
 0x34f   : > { %v1265_v14 = vpop.xlane.xlu1 %1264  ;;  %2501 = vmatprep.mubr.msk.bf16.mxu0 %vm679_vm1, %v1498_v30 }
 0x350   : > { %v2604_v33 = vpop.eup %2603  ;;  %v1336_v24 = vsub.f32 %v1304_v17, %v1320_v57  ;;  %v1305_v56 = vmul.f32 0.03125, %v1265_v14  ;;  %2502 = vmatmul.mubr.msk.bf16.vlgmr.msra.gmra.mrb[8].mxu0 %vm679_vm1, %v1499_v45 }
 0x351   : > { %v1412_v55 = vmul.f32 %v2604_v33, %v1364_v8  ;;  %v1256_v18 = vpop.xlane.xlu0 %1255 }
 0x352   : > { %v2606_v37 = vpop.eup %2605  ;;  %v1352_v49 = vmax.f32 %v1336_v24, 0.0  ;;  %v1337_v36 = vsub.f32 %v1305_v56, %v1321_v10  ;;  %v1302_v12 = vmul.f32 0.03125, %v1256_v18  ;;  %v1368_v10 = vsub.f32 %v3299_v27, %v3413_v53 }
 0x353   : > { %v1413_v7 = vmul.f32 %v2606_v37, %v1365_v35  ;;  %v1259_v34 = vpop.xlane.xlu1 %1258  ;;  %v1434_v52 = vmul.f32 %v3380_v50, %v1412_v55  ;;  %v1369_v27 = vsub.f32 %v3303_v26, %v3415_v0 }
 0x354   : > { %v2608_v61 = vpop.eup %2607  ;;  %v1384_v63 = vadd.f32 1e-05, %v1352_v49  ;;  %v1353_v11 = vmax.f32 %v1337_v36, 0.0  ;;  %v1334_v20 = vsub.f32 %v1302_v12, %v1318_v15  ;;  %v1303_v29 = vmul.f32 0.03125, %v1259_v34 }
 0x355   : > { %v1410_v38 = vmul.f32 %v2608_v61, %v1362_v51  ;;  %v1210_v39 = vpop.xlane.xlu0 %1209  ;;  %v1435_v25 = vmul.f32 %v3380_v50, %v1413_v7  ;;  %v1456_v54 = vadd.f32 %v3396_v46, %v1434_v52 }
 0x356   : > { %v2610_v59 = vpop.eup %2609  ;;  %2611 = vrsqrt.f32 %v1384_v63  ;;  %v1385_v2 = vadd.f32 1e-05, %v1353_v11  ;;  %v1350_v44 = vmax.f32 %v1334_v20, 0.0  ;;  %v1335_v42 = vsub.f32 %v1303_v29, %v1319_v19 }
 0x357   : > { %v1411_v28 = vmul.f32 %v2610_v59, %v1363_v32  ;;  %v1213_v21 = vpop.xlane.xlu1 %1212  ;;  %v1432_v48 = vmul.f32 %v3380_v50, %v1410_v38  ;;  %v1457_v1 = vadd.f32 %v3396_v46, %v1435_v25  ;;  %v1472_v17 = vmul.f32 0.2, %v1456_v54 }
 0x358   : > { %2613 = vrsqrt.f32 %v1385_v2  ;;  %v1382_v4 = vadd.f32 1e-05, %v1350_v44  ;;  %v1351_v47 = vmax.f32 %v1335_v42, 0.0  ;;  %v3451_v8 = vmul.f32 0.03125, %v1210_v39 }
 0x359   : > { %v1204_v43 = vpop.xlane.xlu0 %1203  ;;  %v1433_v40 = vmul.f32 %v3380_v50, %v1411_v28  ;;  %v1454_v6 = vadd.f32 %v3396_v46, %v1432_v48  ;;  %v1473_v45 = vmul.f32 0.2, %v1457_v1  ;;  %v3457_v35 = vmul.f32 0.03125, %v1213_v21 }
 0x35a   : > { %2615 = vrsqrt.f32 %v1382_v4  ;;  %v1383_v58 = vadd.f32 1e-05, %v1351_v47  ;;  %v3446_v62 = vmul.f32 0.03125, %v1204_v43  ;;  %v1488_v7 = vmax.f32 %v1456_v54, %v1472_v17 }
 0x35b   : > { %v1207_v3 = vpop.xlane.xlu1 %1206  ;;  %v1455_v5 = vadd.f32 %v3396_v46, %v1433_v40  ;;  %v1470_v30 = vmul.f32 0.2, %v1454_v6  ;;  %v1489_v15 = vmax.f32 %v1457_v1, %v1473_v45  ;;  %v1324_v19 = vmul.f32 %v3451_v8, %v3451_v8 }
 0x35c   : > { %2617 = vrsqrt.f32 %v1383_v58  ;;  %v3449_v57 = vmul.f32 0.03125, %v1207_v3  ;;  %v1322_v24 = vmul.f32 %v3446_v62, %v3446_v62  ;;  %v1366_v32 = vsub.f32 %v3307_v60, %v3419_v9 }
 0x35d   : > { %v1268_v14 = vpop.xlane.xlu0 %1267  ;;  %v1471_v33 = vmul.f32 0.2, %v1455_v5  ;;  %v1486_v18 = vmax.f32 %v1454_v6, %v1470_v30  ;;  %v1501_v29 = vpack.c.bf16 %v1489_v15, %v1488_v7  ;;  %v1325_v39 = vmul.f32 %v3457_v35, %v3457_v35 }
 0x35e   : > { %v1306_v56 = vmul.f32 0.03125, %v1268_v14  ;;  %v1323_v36 = vmul.f32 %v3449_v57, %v3449_v57  ;;  %v1367_v28 = vsub.f32 %v3312_v31, %v3423_v13 }
 0x35f   : > { %v1271_v55 = vpop.xlane.xlu1 %1270  ;;  %v1487_v37 = vmax.f32 %v1455_v5, %v1471_v33 }
 0x360   : > { %v2612_v49 = vpop.eup %2611  ;;  %v1338_v12 = vsub.f32 %v1306_v56, %v1322_v24  ;;  %v1307_v51 = vmul.f32 0.03125, %v1271_v55 }
 0x361   : > { %v1416_v53 = vmul.f32 %v2612_v49, %v1368_v10  ;;  %v1274_v34 = vpop.xlane.xlu0 %1273  ;;  %v1500_v52 = vpack.c.bf16 %v1487_v37, %v1486_v18  ;;  %v1370_v10 = vsub.f32 %v3339_v22, %v3446_v62  ;;  %v1371_v37 = vsub.f32 %v3344_v23, %v3449_v57 }
 0x362   : > { %v2614_v61 = vpop.eup %2613  ;;  %v1354_v63 = vmax.f32 %v1338_v12, 0.0  ;;  %v1339_v11 = vsub.f32 %v1307_v51, %v1323_v36  ;;  %v1308_v20 = vmul.f32 0.03125, %v1274_v34  ;;  %v1372_v51 = vsub.f32 %v3331_v41, %v3451_v8 }
 0x363   : > { %v1417_v38 = vmul.f32 %v2614_v61, %v1369_v27  ;;  %v1277_v25 = vpop.xlane.xlu1 %1276  ;;  %2505 = vmatprep.mubr.msk.bf16.mxu0 %vm679_vm1, %v1500_v52  ;;  %v1438_v26 = vmul.f32 %v3380_v50, %v1416_v53  ;;  %v1373_v62 = vsub.f32 %v3335_v16, %v3457_v35 }
 0x364   : > { %v2616_v0 = vpop.eup %2615  ;;  %v1386_v59 = vadd.f32 1e-05, %v1354_v63  ;;  %v1355_v2 = vmax.f32 %v1339_v11, 0.0  ;;  %v1340_v44 = vsub.f32 %v1308_v20, %v1324_v19  ;;  %v1309_v42 = vmul.f32 0.03125, %v1277_v25  ;;  %2506 = vmatmul.mubr.msk.bf16.gmra.mrb[12].mxu0 %vm679_vm1, %v1501_v29 }
 0x365   : > { %v1414_v60 = vmul.f32 %v2616_v0, %v1366_v32  ;;  %v1439_v9 = vmul.f32 %v3380_v50, %v1417_v38  ;;  %v1460_v58 = vadd.f32 %v3396_v46, %v1438_v26 }
 0x366   : > { %v2618_v21 = vpop.eup %2617  ;;  %2619 = vrsqrt.f32 %v1386_v59  ;;  %v1387_v48 = vadd.f32 1e-05, %v1355_v2  ;;  %v1356_v54 = vmax.f32 %v1340_v44, 0.0  ;;  %v1341_v4 = vsub.f32 %v1309_v42, %v1325_v39 }
 0x367   : > { %v1415_v47 = vmul.f32 %v2618_v21, %v1367_v28  ;;  %v1436_v1 = vmul.f32 %v3380_v50, %v1414_v60  ;;  %v1461_v43 = vadd.f32 %v3396_v46, %v1439_v9  ;;  %v1476_v45 = vmul.f32 0.2, %v1460_v58 }
 0x368   : > { %2621 = vrsqrt.f32 %v1387_v48  ;;  %v1388_v40 = vadd.f32 1e-05, %v1356_v54  ;;  %v1357_v6 = vmax.f32 %v1341_v4, 0.0 }
 0x369   : > { %v1437_v31 = vmul.f32 %v3380_v50, %v1415_v47  ;;  %v1458_v13 = vadd.f32 %v3396_v46, %v1436_v1  ;;  %v1477_v5 = vmul.f32 0.2, %v1461_v43  ;;  %v1492_v18 = vmax.f32 %v1460_v58, %v1476_v45 }
 0x36a   : > { %2623 = vrsqrt.f32 %v1388_v40  ;;  %v1389_v3 = vadd.f32 1e-05, %v1357_v6 }
 0x36b   : > { %v1459_v30 = vadd.f32 %v3396_v46, %v1437_v31  ;;  %v1474_v17 = vmul.f32 0.2, %v1458_v13  ;;  %v1493_v33 = vmax.f32 %v1461_v43, %v1477_v5 }
 0x36c   : > { %2625 = vrsqrt.f32 %v1389_v3 }
 0x36d   : > { %v1475_v14 = vmul.f32 0.2, %v1459_v30  ;;  %v1490_v24 = vmax.f32 %v1458_v13, %v1474_v17  ;;  %v1503_v12 = vpack.c.bf16 %v1493_v33, %v1492_v18 }
 0x36f   : > { %v1491_v56 = vmax.f32 %v1459_v30, %v1475_v14 }
 0x370   : > { %v2620_v55 = vpop.eup %2619 }
 0x371   : > { %v1418_v15 = vmul.f32 %v2620_v55, %v1370_v10  ;;  %v1502_v49 = vpack.c.bf16 %v1491_v56, %v1490_v24 }
 0x372   : > { %v2622_v36 = vpop.eup %2621 }
 0x373   : > { %v1419_v7 = vmul.f32 %v2622_v36, %v1371_v37  ;;  %2509 = vmatprep.mubr.msk.bf16.mxu0 %vm679_vm1, %v1502_v49  ;;  %v1440_v27 = vmul.f32 %v3380_v50, %v1418_v15 }
 0x374   : > { %v2624_v22 = vpop.eup %2623  ;;  %2510 = vmatmul.mubr.msk.bf16.gmra.mrb[16].mxu0 %vm679_vm1, %v1503_v12 }
 0x375   : > { %v1420_v53 = vmul.f32 %v2624_v22, %v1372_v51  ;;  %v1441_v23 = vmul.f32 %v3380_v50, %v1419_v7  ;;  %v1462_v57 = vadd.f32 %v3396_v46, %v1440_v27 }
 0x376   : > { %v2626_v19 = vpop.eup %2625 }
 0x377   : > { %v1421_v34 = vmul.f32 %v2626_v19, %v1373_v62  ;;  %v1463_v41 = vadd.f32 %v3396_v46, %v1441_v23  ;;  %v1478_v8 = vmul.f32 0.2, %v1462_v57  ;;  %v1442_v52 = vmul.f32 %v3380_v50, %v1420_v53 }
 0x379   : > { %v1479_v61 = vmul.f32 0.2, %v1463_v41  ;;  %v1443_v63 = vmul.f32 %v3380_v50, %v1421_v34  ;;  %v1464_v11 = vadd.f32 %v3396_v46, %v1442_v52  ;;  %v1494_v20 = vmax.f32 %v1462_v57, %v1478_v8  ;;  %v3504_v50 = vld [vmem:[%s3913_s10] ss:$0 sm:$0xff] }
 0x37b   : > { %v1495_v29 = vmax.f32 %v1463_v41, %v1479_v61  ;;  %v1465_v16 = vadd.f32 %v3396_v46, %v1443_v63  ;;  %v1480_v35 = vmul.f32 0.2, %v1464_v11 }
 0x37d   : > { %v1504_v32 = vpack.c.bf16 %v1495_v29, %v1494_v20  ;;  %v1481_v38 = vmul.f32 0.2, %v1465_v16  ;;  %v1496_v39 = vmax.f32 %v1464_v11, %v1480_v35 }
 0x37f   : > { %2513 = vmatprep.mubr.msk.bf16.mxu0 %vm679_vm1, %v1504_v32  ;;  %v1497_v25 = vmax.f32 %v1465_v16, %v1481_v38 }
 0x381   : > { %v1505_v26 = vpack.c.bf16 %v1497_v25, %v1496_v39 }
 0x383   : > { %2514 = vmatmul.mubr.msk.bf16.gmra.mrb[20].mxu0 %vm679_vm1, %v1505_v26 }
 0x423   : > { %v2503_v0 = vpop.f32.mrb[8].mxu0 }
 0x424   : > { %v3507_v59 = vadd.f32 %v2503_v0, %v3504_v50  ;;  %v1587_v46 = vpop.f32.mrb[9].mxu0 }
 0x425   : > { %v2504_v2 = vpop.f32.mrb[10].mxu0  ;;  %v3510_v44 = vadd.f32 %v3504_v50, %v1587_v46 }
 0x426   : > { %v3513_v42 = vadd.f32 %v2504_v2, %v3504_v50  ;;  %v1590_v28 = vpop.f32.mrb[11].mxu0  ;;  %v1658_v60 = vsel %vm679_vm1, %v3507_v59, 0.0  ;;  %v1702_v21 = vmul.f32 %v3507_v59, %v3507_v59 }
 0x427   : > { %1659 = vadd.xlane.f32.xlu0 %v1658_v60  ;;  %v1652_v48 = vsel %vm679_vm1, %v3510_v44, 0.0  ;;  %v1700_v54 = vmul.f32 %v3510_v44, %v3510_v44  ;;  %v3526_v4 = vadd.f32 %v3504_v50, %v1590_v28 }
 0x428   : > { %v1661_v9 = vsel %vm679_vm1, %v3513_v42, 0.0  ;;  %v1722_v47 = vsel %vm679_vm1, %v1702_v21, 0.0  ;;  %v1703_v40 = vmul.f32 %v3513_v42, %v3513_v42 }
 0x429   : > { %1662 = vadd.xlane.f32.xlu1 %v1661_v9  ;;  %v1716_v1 = vsel %vm679_vm1, %v1700_v54, 0.0  ;;  %v1655_v43 = vsel %vm679_vm1, %v3526_v4, 0.0  ;;  %v1701_v58 = vmul.f32 %v3526_v4, %v3526_v4 }
 0x42a   : > { %v1725_v6 = vsel %vm679_vm1, %v1703_v40, 0.0 }
 0x42b   : > { %1653 = vadd.xlane.f32.xlu0 %v1652_v48  ;;  %v1719_v5 = vsel %vm679_vm1, %v1701_v58, 0.0 }
 0x42d   : > { %1723 = vadd.xlane.f32.xlu1 %v1722_v47 }
 0x42f   : > { %1717 = vadd.xlane.f32.xlu0 %v1716_v1 }
 0x431   : > { %1656 = vadd.xlane.f32.xlu1 %v1655_v43 }
 0x435   : > { %1726 = vadd.xlane.f32.xlu1 %v1725_v6 }
 0x437   : > { %v2507_v31 = vpop.f32.mrb[12].mxu0 }
 0x438   : > { %v3538_v13 = vadd.f32 %v2507_v31, %v3504_v50  ;;  %v1603_v3 = vpop.f32.mrb[13].mxu0 }
 0x439   : > { %v3542_v30 = vadd.f32 %v3504_v50, %v1603_v3  ;;  %1720 = vadd.xlane.f32.xlu1 %v1719_v5  ;;  %v2508_v17 = vpop.f32.mrb[14].mxu0 }
 0x43a   : > { %v1606_v45 = vpop.f32.mrb[15].mxu0  ;;  %v1670_v14 = vsel %vm679_vm1, %v3538_v13, 0.0  ;;  %v1706_v33 = vmul.f32 %v3538_v13, %v3538_v13  ;;  %v3549_v10 = vadd.f32 %v2508_v17, %v3504_v50 }
 0x43b   : > { %1671 = vadd.xlane.f32.xlu0 %v1670_v14  ;;  %v1704_v56 = vmul.f32 %v3542_v30, %v3542_v30  ;;  %v1664_v55 = vsel %vm679_vm1, %v3542_v30, 0.0  ;;  %v3557_v18 = vadd.f32 %v3504_v50, %v1606_v45 }
 0x43c   : > { %v1734_v24 = vsel %vm679_vm1, %v1706_v33, 0.0  ;;  %v1707_v15 = vmul.f32 %v3549_v10, %v3549_v10  ;;  %v1673_v49 = vsel %vm679_vm1, %v3549_v10, 0.0 }
 0x43d   : > { %1735 = vadd.xlane.f32.xlu1 %v1734_v24  ;;  %v1728_v37 = vsel %vm679_vm1, %v1704_v56, 0.0  ;;  %v1705_v12 = vmul.f32 %v3557_v18, %v3557_v18  ;;  %v1667_v51 = vsel %vm679_vm1, %v3557_v18, 0.0 }
 0x43e   : > { %v1737_v36 = vsel %vm679_vm1, %v1707_v15, 0.0 }
 0x43f   : > { %1665 = vadd.xlane.f32.xlu0 %v1664_v55  ;;  %v1731_v62 = vsel %vm679_vm1, %v1705_v12, 0.0 }
 0x441   : > { %1729 = vadd.xlane.f32.xlu1 %v1728_v37 }
 0x443   : > { %1674 = vadd.xlane.f32.xlu0 %v1673_v49 }
 0x445   : > { %1738 = vadd.xlane.f32.xlu1 %v1737_v36 }
 0x447   : > { %1668 = vadd.xlane.f32.xlu0 %v1667_v51  ;;  %v2511_v7 = vpop.f32.mrb[16].mxu0 }
 0x448   : > { %v3570_v27 = vadd.f32 %v2511_v7, %v3504_v50  ;;  %v1619_v22 = vpop.f32.mrb[17].mxu0 }
 0x449   : > { %v3574_v53 = vadd.f32 %v3504_v50, %v1619_v22  ;;  %1732 = vadd.xlane.f32.xlu1 %v1731_v62  ;;  %v2512_v23 = vpop.f32.mrb[18].mxu0 }
 0x44a   : > { %v1622_v57 = vpop.f32.mrb[19].mxu0  ;;  %v1682_v19 = vsel %vm679_vm1, %v3570_v27, 0.0  ;;  %v1710_v34 = vmul.f32 %v3570_v27, %v3570_v27  ;;  %v3581_v41 = vadd.f32 %v2512_v23, %v3504_v50 }
 0x44b   : > { %1683 = vadd.xlane.f32.xlu0 %v1682_v19  ;;  %v1708_v52 = vmul.f32 %v3574_v53, %v3574_v53  ;;  %v1676_v61 = vsel %vm679_vm1, %v3574_v53, 0.0  ;;  %v3589_v63 = vadd.f32 %v3504_v50, %v1622_v57 }
 0x44c   : > { %v1746_v8 = vsel %vm679_vm1, %v1710_v34, 0.0  ;;  %v1711_v20 = vmul.f32 %v3581_v41, %v3581_v41  ;;  %v1685_v29 = vsel %vm679_vm1, %v3581_v41, 0.0 }
 0x44d   : > { %1747 = vadd.xlane.f32.xlu1 %v1746_v8  ;;  %v1740_v11 = vsel %vm679_vm1, %v1708_v52, 0.0  ;;  %v1709_v35 = vmul.f32 %v3589_v63, %v3589_v63  ;;  %v1679_v38 = vsel %vm679_vm1, %v3589_v63, 0.0 }
 0x44e   : > { %v1749_v16 = vsel %vm679_vm1, %v1711_v20, 0.0 }
 0x44f   : > { %1677 = vadd.xlane.f32.xlu0 %v1676_v61  ;;  %v1743_v46 = vsel %vm679_vm1, %v1709_v35, 0.0 }
 0x451   : > { %1741 = vadd.xlane.f32.xlu1 %v1740_v11 }
 0x453   : > { %1686 = vadd.xlane.f32.xlu0 %v1685_v29 }
 0x455   : > { %1750 = vadd.xlane.f32.xlu1 %v1749_v16 }
 0x456   : > { %v2515_v32 = vpop.f32.mrb[20].mxu0 }
 0x457   : > { %v3602_v39 = vadd.f32 %v2515_v32, %v3504_v50  ;;  %1680 = vadd.xlane.f32.xlu0 %v1679_v38  ;;  %v1635_v25 = vpop.f32.mrb[21].mxu0 }
 0x458   : > { %v3605_v26 = vadd.f32 %v3504_v50, %v1635_v25  ;;  %v2516_v0 = vpop.f32.mrb[22].mxu0 }
 0x459   : > { %1744 = vadd.xlane.f32.xlu1 %v1743_v46  ;;  %v1638_v2 = vpop.f32.mrb[23].mxu0  ;;  %v1694_v28 = vsel %vm679_vm1, %v3602_v39, 0.0  ;;  %v3616_v21 = vadd.f32 %v2516_v0, %v3504_v50  ;;  %v1714_v58 = vmul.f32 %v3602_v39, %v3602_v39 }
 0x45a   : > { %v3611_v60 = vadd.f32 %v3504_v50, %v1638_v2  ;;  %v1712_v9 = vmul.f32 %v3605_v26, %v3605_v26  ;;  %v1688_v47 = vsel %vm679_vm1, %v3605_v26, 0.0 }
 0x45b   : > { %1695 = vadd.xlane.f32.xlu0 %v1694_v28  ;;  %v1715_v43 = vmul.f32 %v3616_v21, %v3616_v21  ;;  %v1697_v50 = vsel %vm679_vm1, %v3616_v21, 0.0  ;;  %v1758_v31 = vsel %vm679_vm1, %v1714_v58, 0.0 }
 0x45c   : > { %v1752_v48 = vsel %vm679_vm1, %v1712_v9, 0.0  ;;  %v1713_v54 = vmul.f32 %v3611_v60, %v3611_v60  ;;  %v1691_v6 = vsel %vm679_vm1, %v3611_v60, 0.0 }
 0x45d   : > { %1753 = vadd.xlane.f32.xlu1 %v1752_v48  ;;  %v1761_v40 = vsel %vm679_vm1, %v1715_v43, 0.0 }
 0x45e   : > { %v1755_v1 = vsel %vm679_vm1, %v1713_v54, 0.0 }
 0x45f   : > { %1689 = vadd.xlane.f32.xlu0 %v1688_v47 }
 0x461   : > { %1756 = vadd.xlane.f32.xlu1 %v1755_v1  ;;  %v3652_v1 = vld [vmem:[%s3914_s11] ss:$0 sm:$0xff] }
 0x463   : > { %1698 = vadd.xlane.f32.xlu0 %v1697_v50 }
 0x465   : > { %1762 = vadd.xlane.f32.xlu1 %v1761_v40 }
 0x467   : > { %1692 = vadd.xlane.f32.xlu0 %v1691_v6 }
 0x46b   : > { %1759 = vadd.xlane.f32.xlu0 %v1758_v31 }
 0x4b4   : > { %v1660_v3 = vpop.xlane.xlu0 %1659 }
 0x4b5   : > { %v1766_v17 = vmul.f32 0.03125, %v1660_v3  ;;  %v3660_v3 = vld [vmem:[%s3915_s12] ss:$0 sm:$0xff] }
 0x4b6   : > { %v1663_v5 = vpop.xlane.xlu1 %1662 }
 0x4b7   : > { %v1798_v24 = vmul.f32 %v1766_v17, %v1766_v17  ;;  %v3634_v36 = vmul.f32 0.03125, %v1663_v5  ;;  %v1846_v2 = vsub.f32 %v3507_v59, %v1766_v17 }
 0x4b8   : > { %v1654_v45 = vpop.xlane.xlu0 %1653 }
 0x4b9   : > { %v1764_v14 = vmul.f32 0.03125, %v1654_v45  ;;  %v1799_v23 = vmul.f32 %v3634_v36, %v3634_v36 }
 0x4ba   : > { %v1724_v33 = vpop.xlane.xlu1 %1723 }
 0x4bb   : > { %v1782_v56 = vmul.f32 0.03125, %v1724_v33  ;;  %v1796_v37 = vmul.f32 %v1764_v14, %v1764_v14  ;;  %v1844_v43 = vsub.f32 %v3510_v44, %v1764_v14 }
 0x4bc   : > { %v1718_v55 = vpop.xlane.xlu0 %1717 }
 0x4bd   : > { %v1814_v15 = vsub.f32 %v1782_v56, %v1798_v24  ;;  %v1780_v49 = vmul.f32 0.03125, %v1718_v55 }
 0x4be   : > { %v1657_v12 = vpop.xlane.xlu1 %1656 }
 0x4bf   : > { %v1830_v51 = vmax.f32 %v1814_v15, 0.0  ;;  %v1812_v7 = vsub.f32 %v1780_v49, %v1796_v37  ;;  %v3638_v34 = vmul.f32 0.03125, %v1657_v12 }
 0x4c1   : > { %v1862_v22 = vadd.f32 1e-05, %v1830_v51  ;;  %v1828_v62 = vmax.f32 %v1812_v7, 0.0  ;;  %v1797_v11 = vmul.f32 %v3638_v34, %v3638_v34  ;;  %v1847_v51 = vsub.f32 %v3513_v42, %v3634_v36 }
 0x4c2   : > { %v1727_v57 = vpop.xlane.xlu1 %1726 }
 0x4c3   : > { %2627 = vrsqrt.f32 %v1862_v22  ;;  %v1860_v19 = vadd.f32 1e-05, %v1828_v62  ;;  %v1783_v8 = vmul.f32 0.03125, %v1727_v57 }
 0x4c5   : > { %2629 = vrsqrt.f32 %v1860_v19  ;;  %v1815_v52 = vsub.f32 %v1783_v8, %v1799_v23 }
 0x4c6   : > { %v1721_v61 = vpop.xlane.xlu1 %1720 }
 0x4c7   : > { %v1831_v20 = vmax.f32 %v1815_v52, 0.0  ;;  %v1781_v29 = vmul.f32 0.03125, %v1721_v61  ;;  %v3677_v52 = vld [vmem:[%s3916_s13] ss:$0 sm:$0xff] }
 0x4c8   : > { %v1672_v16 = vpop.xlane.xlu0 %1671 }
 0x4c9   : > { %v1863_v35 = vadd.f32 1e-05, %v1831_v20  ;;  %v1813_v32 = vsub.f32 %v1781_v29, %v1797_v11  ;;  %v3642_v38 = vmul.f32 0.03125, %v1672_v16 }
 0x4ca   : > { %v1736_v25 = vpop.xlane.xlu1 %1735 }
 0x4cb   : > { %2631 = vrsqrt.f32 %v1863_v35  ;;  %v1829_v0 = vmax.f32 %v1813_v32, 0.0  ;;  %v1802_v46 = vmul.f32 %v3642_v38, %v3642_v38  ;;  %v1786_v28 = vmul.f32 0.03125, %v1736_v25 }
 0x4cc   : > { %v1666_v9 = vpop.xlane.xlu0 %1665 }
 0x4cd   : > { %v2628_v48 = vpop.eup %2627  ;;  %v1861_v54 = vadd.f32 1e-05, %v1829_v0  ;;  %v3647_v47 = vmul.f32 0.03125, %v1666_v9  ;;  %v1818_v50 = vsub.f32 %v1786_v28, %v1802_v46 }
 0x4ce   : > { %v1730_v40 = vpop.xlane.xlu1 %1729  ;;  %v1894_v6 = vmul.f32 %v2628_v48, %v1846_v2  ;;  %v1845_v2 = vsub.f32 %v3526_v4, %v3638_v34 }
 0x4cf   : > { %v2630_v58 = vpop.eup %2629  ;;  %2633 = vrsqrt.f32 %v1861_v54  ;;  %v1800_v59 = vmul.f32 %v3647_v47, %v3647_v47  ;;  %v1784_v31 = vmul.f32 0.03125, %v1730_v40  ;;  %v1834_v5 = vmax.f32 %v1818_v50, 0.0 }
 0x4d0   : > { %v1675_v17 = vpop.xlane.xlu0 %1674  ;;  %v1916_v45 = vmul.f32 %v3652_v1, %v1894_v6  ;;  %v1892_v33 = vmul.f32 %v2630_v58, %v1844_v43 }
 0x4d1   : > { %v1816_v44 = vsub.f32 %v1784_v31, %v1800_v59  ;;  %v3663_v14 = vmul.f32 0.03125, %v1675_v17  ;;  %v1866_v24 = vadd.f32 1e-05, %v1834_v5  ;;  %v1850_v5 = vsub.f32 %v3538_v13, %v3642_v38 }
 0x4d2   : > { %v1739_v56 = vpop.xlane.xlu1 %1738  ;;  %v1938_v55 = vadd.f32 %v3660_v3, %v1916_v45  ;;  %v1914_v37 = vmul.f32 %v3652_v1, %v1892_v33 }
 0x4d3   : > { %v1832_v15 = vmax.f32 %v1816_v44, 0.0  ;;  %v1803_v49 = vmul.f32 %v3663_v14, %v3663_v14  ;;  %v1787_v12 = vmul.f32 0.03125, %v1739_v56  ;;  %2635 = vrsqrt.f32 %v1866_v24 }
 0x4d4   : > { %v1669_v7 = vpop.xlane.xlu0 %1668  ;;  %v1954_v22 = vmul.f32 0.2, %v1938_v55  ;;  %v1936_v62 = vadd.f32 %v3660_v3, %v1914_v37 }
 0x4d5   : > { %v2632_v23 = vpop.eup %2631  ;;  %v1864_v57 = vadd.f32 1e-05, %v1832_v15  ;;  %v1819_v19 = vsub.f32 %v1787_v12, %v1803_v49  ;;  %v3672_v8 = vmul.f32 0.03125, %v1669_v7  ;;  %v1848_v15 = vsub.f32 %v3542_v30, %v3647_v47 }
 0x4d6   : > { %v1733_v61 = vpop.xlane.xlu1 %1732  ;;  %v1970_v11 = vmax.f32 %v1938_v55, %v1954_v22  ;;  %v1952_v20 = vmul.f32 0.2, %v1936_v62  ;;  %v1895_v29 = vmul.f32 %v2632_v23, %v1847_v51 }
 0x4d7   : > { %2637 = vrsqrt.f32 %v1864_v57  ;;  %v1835_v42 = vmax.f32 %v1819_v19, 0.0  ;;  %v1801_v36 = vmul.f32 %v3672_v8, %v3672_v8  ;;  %v1785_v16 = vmul.f32 0.03125, %v1733_v61 }
 0x4d8   : > { %v1684_v35 = vpop.xlane.xlu0 %1683  ;;  %v1993_v32 = vmul.f32 %v3677_v52, %v1970_v11  ;;  %v1968_v25 = vmax.f32 %v1936_v62, %v1952_v20  ;;  %v1917_v0 = vmul.f32 %v3652_v1, %v1895_v29 }
 0x4d9   : > { %v2634_v46 = vpop.eup %2633  ;;  %v1867_v28 = vadd.f32 1e-05, %v1835_v42  ;;  %v3685_v9 = vmul.f32 0.03125, %v1684_v35  ;;  %v1817_v48 = vsub.f32 %v1785_v16, %v1801_v36 }
 0x4da   : > { %v1748_v54 = vpop.xlane.xlu1 %1747  ;;  %v2013_v43 = vsel %vm679_vm1, %v1993_v32, 0.0  ;;  %v1991_v50 = vmul.f32 %v3677_v52, %v1968_v25  ;;  %v1939_v40 = vadd.f32 %v3660_v3, %v1917_v0  ;;  %v1893_v34 = vmul.f32 %v2634_v46, %v1845_v2 }
 0x4db   : > { %v1806_v6 = vmul.f32 %v3685_v9, %v3685_v9  ;;  %v1790_v58 = vmul.f32 0.03125, %v1748_v54  ;;  %2014 = vadd.xlane.f32.xlu0 %v2013_v43  ;;  %2639 = vrsqrt.f32 %v1867_v28  ;;  %v1833_v59 = vmax.f32 %v1817_v48, 0.0 }
 0x4dc   : > { %v1678_v31 = vpop.xlane.xlu0 %1677  ;;  %v1955_v4 = vmul.f32 0.2, %v1939_v40  ;;  %v2007_v56 = vsel %vm679_vm1, %v1991_v50, 0.0  ;;  %v1915_v37 = vmul.f32 %v3652_v1, %v1893_v34 }
 0x4dd   : > { %v1822_v17 = vsub.f32 %v1790_v58, %v1806_v6  ;;  %v3694_v45 = vmul.f32 0.03125, %v1678_v31  ;;  %v2636_v33 = vpop.eup %2635  ;;  %v1865_v44 = vadd.f32 1e-05, %v1833_v59 }
 0x4de   : > { %v1742_v24 = vpop.xlane.xlu1 %1741  ;;  %v1971_v55 = vmax.f32 %v1939_v40, %v1955_v4  ;;  %v1937_v7 = vadd.f32 %v3660_v3, %v1915_v37  ;;  %v1898_v22 = vmul.f32 %v2636_v33, %v1850_v5  ;;  %v1851_v40 = vsub.f32 %v3549_v10, %v3663_v14 }
 0x4df   : > { %v1838_v49 = vmax.f32 %v1822_v17, 0.0  ;;  %v1804_v12 = vmul.f32 %v3694_v45, %v3694_v45  ;;  %v1788_v51 = vmul.f32 0.03125, %v1742_v24  ;;  %2008 = vadd.xlane.f32.xlu0 %v2007_v56  ;;  %2641 = vrsqrt.f32 %v1865_v44 }
 0x4e0   : > { %v1687_v13 = vpop.xlane.xlu0 %1686  ;;  %v1994_v38 = vmul.f32 %v3677_v52, %v1971_v55  ;;  %v1953_v47 = vmul.f32 0.2, %v1937_v7  ;;  %v1920_v11 = vmul.f32 %v3652_v1, %v1898_v22  ;;  %v1849_v14 = vsub.f32 %v3557_v18, %v3672_v8 }
 0x4e1   : > { %v2638_v62 = vpop.eup %2637  ;;  %v1870_v23 = vadd.f32 1e-05, %v1838_v49  ;;  %v1820_v57 = vsub.f32 %v1788_v51, %v1804_v12  ;;  %v3704_v19 = vmul.f32 0.03125, %v1687_v13  ;;  %v1854_v37 = vsub.f32 %v3570_v27, %v3685_v9 }
 0x4e2   : > { %v1751_v61 = vpop.xlane.xlu1 %1750  ;;  %v2016_v30 = vsel %vm679_vm1, %v1994_v38, 0.0  ;;  %v1896_v20 = vmul.f32 %v2638_v62, %v1848_v15  ;;  %v1969_v35 = vmax.f32 %v1937_v7, %v1953_v47  ;;  %v1942_v32 = vadd.f32 %v3660_v3, %v1920_v11 }
 0x4e3   : > { %2643 = vrsqrt.f32 %v1870_v23  ;;  %v1836_v29 = vmax.f32 %v1820_v57, 0.0  ;;  %v1807_v42 = vmul.f32 %v3704_v19, %v3704_v19  ;;  %2017 = vadd.xlane.f32.xlu1 %v2016_v30  ;;  %v1791_v36 = vmul.f32 0.03125, %v1751_v61 }
 0x4e4   : > { %v1681_v16 = vpop.xlane.xlu0 %1680  ;;  %v1918_v25 = vmul.f32 %v3652_v1, %v1896_v20  ;;  %v1992_v54 = vmul.f32 %v3677_v52, %v1969_v35  ;;  %v1958_v43 = vmul.f32 0.2, %v1942_v32  ;;  %v1852_v61 = vsub.f32 %v3574_v53, %v3694_v45 }
 0x4e5   : > { %v1868_v0 = vadd.f32 1e-05, %v1836_v29  ;;  %v3712_v46 = vmul.f32 0.03125, %v1681_v16  ;;  %v2640_v2 = vpop.eup %2639  ;;  %v1823_v28 = vsub.f32 %v1791_v36, %v1807_v42  ;;  %v1855_v42 = vsub.f32 %v3581_v41, %v3704_v19 }
 0x4e6   : > { %v1745_v48 = vpop.xlane.xlu1 %1744  ;;  %v1940_v50 = vadd.f32 %v3660_v3, %v1918_v25  ;;  %v2010_v31 = vsel %vm679_vm1, %v1992_v54, 0.0  ;;  %v1974_v34 = vmax.f32 %v1942_v32, %v1958_v43  ;;  %v1899_v33 = vmul.f32 %v2640_v2, %v1851_v40 }
 0x4e7   : > { %2645 = vrsqrt.f32 %v1868_v0  ;;  %v1805_v6 = vmul.f32 %v3712_v46, %v3712_v46  ;;  %v1789_v58 = vmul.f32 0.03125, %v1745_v48  ;;  %v1839_v59 = vmax.f32 %v1823_v28, 0.0  ;;  %2011 = vadd.xlane.f32.xlu1 %v2010_v31 }
 0x4e8   : > { %v1696_v4 = vpop.xlane.xlu0 %1695  ;;  %v1956_v5 = vmul.f32 0.2, %v1940_v50  ;;  %v1997_v55 = vmul.f32 %v3677_v52, %v1974_v34  ;;  %v1921_v13 = vmul.f32 %v3652_v1, %v1899_v33  ;;  %v1853_v0 = vsub.f32 %v3589_v63, %v3712_v46 }
 0x4e9   : > { %v1821_v17 = vsub.f32 %v1789_v58, %v1805_v6  ;;  %v2642_v44 = vpop.eup %2641  ;;  %v1871_v24 = vadd.f32 1e-05, %v1839_v59  ;;  %v3751_v40 = vmul.f32 0.03125, %v1696_v4 }
 0x4ea   : > { %v1754_v56 = vpop.xlane.xlu1 %1753  ;;  %v1972_v10 = vmax.f32 %v1940_v50, %v1956_v5  ;;  %v2025_v49 = vsel %vm679_vm1, %v1997_v55, 0.0  ;;  %v1897_v62 = vmul.f32 %v2642_v44, %v1849_v14  ;;  %v1943_v27 = vadd.f32 %v3660_v3, %v1921_v13 }
 0x4eb   : > { %v1837_v15 = vmax.f32 %v1821_v17, 0.0  ;;  %2647 = vrsqrt.f32 %v1871_v24  ;;  %2026 = vadd.xlane.f32.xlu0 %v2025_v49  ;;  %v1792_v9 = vmul.f32 0.03125, %v1754_v56 }
 0x4ec   : > { %v1690_v12 = vpop.xlane.xlu0 %1689  ;;  %v1995_v51 = vmul.f32 %v3677_v52, %v1972_v10  ;;  %v1959_v47 = vmul.f32 0.2, %v1943_v27  ;;  %v1919_v11 = vmul.f32 %v3652_v1, %v1897_v62 }
 0x4ed   : > { %v2644_v38 = vpop.eup %2643  ;;  %v1869_v7 = vadd.f32 1e-05, %v1837_v15  ;;  %v3729_v22 = vmul.f32 0.03125, %v1690_v12 }
 0x4ee   : > { %v1757_v23 = vpop.xlane.xlu1 %1756  ;;  %v2019_v18 = vsel %vm679_vm1, %v1995_v51, 0.0  ;;  %v1902_v8 = vmul.f32 %v2644_v38, %v1854_v37  ;;  %v1975_v32 = vmax.f32 %v1943_v27, %v1959_v47  ;;  %v1941_v25 = vadd.f32 %v3660_v3, %v1919_v11 }
 0x4ef   : > { %2649 = vrsqrt.f32 %v1869_v7  ;;  %v1808_v57 = vmul.f32 %v3729_v22, %v3729_v22  ;;  %2020 = vadd.xlane.f32.xlu0 %v2019_v18  ;;  %v1793_v17 = vmul.f32 0.03125, %v1757_v23  ;;  %v1810_v37 = vmul.f32 %v3751_v40, %v3751_v40 }
 0x4f0   : > { %v1699_v30 = vpop.xlane.xlu0 %1698  ;;  %v1924_v20 = vmul.f32 %v3652_v1, %v1902_v8  ;;  %v1998_v41 = vmul.f32 %v3677_v52, %v1975_v32  ;;  %v1957_v54 = vmul.f32 0.2, %v1941_v25 }
 0x4f1   : > { %v2646_v29 = vpop.eup %2645  ;;  %v1824_v36 = vsub.f32 %v1792_v9, %v1808_v57  ;;  %v3741_v16 = vmul.f32 0.03125, %v1699_v30 }
 0x4f2   : > { %v1763_v35 = vpop.xlane.xlu1 %1762  ;;  %v1946_v53 = vadd.f32 %v3660_v3, %v1924_v20  ;;  %v1900_v45 = vmul.f32 %v2646_v29, %v1852_v61  ;;  %v2028_v63 = vsel %vm679_vm1, %v1998_v41, 0.0  ;;  %v1973_v46 = vmax.f32 %v1941_v25, %v1957_v54 }
 0x4f3   : > { %v1840_v2 = vmax.f32 %v1824_v36, 0.0  ;;  %v1811_v28 = vmul.f32 %v3741_v16, %v3741_v16  ;;  %v1795_v48 = vmul.f32 0.03125, %v1763_v35  ;;  %2029 = vadd.xlane.f32.xlu1 %v2028_v63  ;;  %v1856_v29 = vsub.f32 %v3605_v26, %v3729_v22 }
 0x4f4   : > { %v1693_v19 = vpop.xlane.xlu0 %1692  ;;  %v1962_v43 = vmul.f32 0.2, %v1946_v53  ;;  %v1922_v50 = vmul.f32 %v3652_v1, %v1900_v45  ;;  %v1996_v4 = vmul.f32 %v3677_v52, %v1973_v46 }
 0x4f5   : > { %v1872_v6 = vadd.f32 1e-05, %v1840_v2  ;;  %v1827_v58 = vsub.f32 %v1795_v48, %v1811_v28  ;;  %v3753_v59 = vmul.f32 0.03125, %v1693_v19  ;;  %v2648_v31 = vpop.eup %2647 }
 0x4f6   : > { %v1978_v34 = vmax.f32 %v1946_v53, %v1962_v43  ;;  %v1944_v5 = vadd.f32 %v3660_v3, %v1922_v50  ;;  %v1903_v10 = vmul.f32 %v2648_v31, %v1855_v42  ;;  %v2022_v51 = vsel %vm679_vm1, %v1996_v4, 0.0 }
 0x4f7   : > { %2651 = vrsqrt.f32 %v1872_v6  ;;  %v1843_v33 = vmax.f32 %v1827_v58, 0.0  ;;  %v1809_v44 = vmul.f32 %v3753_v59, %v3753_v59  ;;  %2023 = vadd.xlane.f32.xlu1 %v2022_v51  ;;  %v1857_v19 = vsub.f32 %v3611_v60, %v3753_v59 }
 0x4f8   : > { %v1760_v24 = vpop.xlane.xlu0 %1759  ;;  %v2001_v56 = vmul.f32 %v3677_v52, %v1978_v34  ;;  %v1960_v55 = vmul.f32 0.2, %v1944_v5  ;;  %v1925_v7 = vmul.f32 %v3652_v1, %v1903_v10 }
 0x4f9   : > { %v2650_v14 = vpop.eup %2649  ;;  %v1875_v15 = vadd.f32 1e-05, %v1843_v33  ;;  %v1825_v49 = vsub.f32 %v1793_v17, %v1809_v44  ;;  %v1794_v12 = vmul.f32 0.03125, %v1760_v24 }
 0x4fa   : > { %v2037_v13 = vsel %vm679_vm1, %v2001_v56, 0.0  ;;  %v1976_v38 = vmax.f32 %v1944_v5, %v1960_v55  ;;  %v1901_v18 = vmul.f32 %v2650_v14, %v1853_v0  ;;  %v1947_v8 = vadd.f32 %v3660_v3, %v1925_v7 }
 0x4fb   : > { %2653 = vrsqrt.f32 %v1875_v15  ;;  %v1841_v62 = vmax.f32 %v1825_v49, 0.0  ;;  %v1826_v23 = vsub.f32 %v1794_v12, %v1810_v37  ;;  %2038 = vadd.xlane.f32.xlu0 %v2037_v13  ;;  %v1859_v0 = vsub.f32 %v3616_v21, %v3741_v16 }
 0x4fc   : > { %v1999_v27 = vmul.f32 %v3677_v52, %v1976_v38  ;;  %v1923_v61 = vmul.f32 %v3652_v1, %v1901_v18  ;;  %v1963_v47 = vmul.f32 0.2, %v1947_v8  ;;  %v1858_v21 = vsub.f32 %v3602_v39, %v3751_v40 }
 0x4fd   : > { %v1873_v9 = vadd.f32 1e-05, %v1841_v62  ;;  %v1842_v57 = vmax.f32 %v1826_v23, 0.0  ;;  %v3799_v12 = vstv %s2055_s19  ;;  %s2723_s19 = scalar_lea.vmem %s3863_s27, 16 }
 0x4fe   : > { %v2031_v30 = vsel %vm679_vm1, %v1999_v27, 0.0  ;;  %v1945_v20 = vadd.f32 %v3660_v3, %v1923_v61  ;;  %v1979_v42 = vmax.f32 %v1947_v8, %v1963_v47  ;;  %p2724_p11 = scmp.ne.s32.totalorder %s3863_s27, %s2723_s19  ;;  %p2731_p1 = scmp.lt.s32.totalorder %s2729_s2, %s2723_s19 }
 0x4ff   : > { %2655 = vrsqrt.f32 %v1873_v9  ;;  %v1874_v11 = vadd.f32 1e-05, %v1842_v57  ;;  %2032 = vadd.xlane.f32.xlu0 %v2031_v30 }
 0x500   : > { %v1961_v35 = vmul.f32 0.2, %v1945_v20  ;;  %v2002_v25 = vmul.f32 %v3677_v52, %v1979_v42  ;;  %p2725_p12 = pnand %p2724_p11, %p2906_p5  ;;  %p2732_p2 = por %p2731_p1, %p2730_p0 }
 0x501   : > { %v2652_v36 = vpop.eup %2651  ;;  %2657 = vrsqrt.f32 %v1874_v11 }
 0x502   : > { %v1904_v32 = vmul.f32 %v2652_v36, %v1856_v29  ;;  %v1977_v53 = vmax.f32 %v1945_v20, %v1961_v35  ;;  %v2040_v2 = vsel %vm679_vm1, %v2002_v25, 0.0  ;;  %p2726_p13 = pneg %p2725_p12 }
 0x503   : > { %2041 = vadd.xlane.f32.xlu1 %v2040_v2 }
 0x504   : > { %v1926_v45 = vmul.f32 %v3652_v1, %v1904_v32  ;;  %v2000_v48 = vmul.f32 %v3677_v52, %v1977_v53  ;;  %p2733_p3 = pnand %p2732_p2, %p2726_p13 }
 0x505   : > { %v2654_v28 = vpop.eup %2653 }
 0x506   : > { %v1948_v26 = vadd.f32 %v3660_v3, %v1926_v45  ;;  %v1907_v22 = vmul.f32 %v2654_v28, %v1859_v0  ;;  %v2034_v41 = vsel %vm679_vm1, %v2000_v48, 0.0 }
 0x507   : > { %2035 = vadd.xlane.f32.xlu1 %v2034_v41 }
 0x508   : > { %v1964_v54 = vmul.f32 0.2, %v1948_v26  ;;  %v1929_v43 = vmul.f32 %v3652_v1, %v1907_v22 }
 0x509   : > { %v2656_v50 = vpop.eup %2655 }
 0x50a   : > { %v1905_v16 = vmul.f32 %v2656_v50, %v1857_v19  ;;  %v1980_v6 = vmax.f32 %v1948_v26, %v1964_v54  ;;  %v1951_v58 = vadd.f32 %v3660_v3, %v1929_v43 }
 0x50b   : > { %v2658_v31 = vpop.eup %2657 }
 0x50c   : > { %v1927_v63 = vmul.f32 %v3652_v1, %v1905_v16  ;;  %v2003_v46 = vmul.f32 %v3677_v52, %v1980_v6  ;;  %v1906_v34 = vmul.f32 %v2658_v31, %v1858_v21  ;;  %v1967_v5 = vmul.f32 0.2, %v1951_v58 }
 0x50d   : > { %v2185_v6 = vlaneseq }
 0x50e   : > { %v2043_v60 = vsel %vm679_vm1, %v2003_v46, 0.0  ;;  %v1949_v59 = vadd.f32 %v3660_v3, %v1927_v63  ;;  %v1928_v17 = vmul.f32 %v3652_v1, %v1906_v34  ;;  %v1983_v33 = vmax.f32 %v1951_v58, %v1967_v5 }
 0x50f   : > { %2044 = vadd.xlane.f32.xlu0 %v2043_v60 }
 0x510   : > { %v1965_v39 = vmul.f32 0.2, %v1949_v59  ;;  %v1950_v40 = vadd.f32 %v3660_v3, %v1928_v17  ;;  %v2006_v44 = vmul.f32 %v3677_v52, %v1983_v33 }
 0x512   : > { %v1981_v4 = vmax.f32 %v1949_v59, %v1965_v39  ;;  %v1966_v24 = vmul.f32 0.2, %v1950_v40  ;;  %v2052_v1 = vsel %vm679_vm1, %v2006_v44, 0.0  ;;  %v3814_v59 = vand.u32 127, %v2185_v6 }
 0x514   : > { %v2004_v56 = vmul.f32 %v3677_v52, %v1981_v4  ;;  %v1982_v55 = vmax.f32 %v1950_v40, %v1966_v24  ;;  %v2191_v4 = vadd.s32 4294967288, %v3814_v59 }
 0x516   : > { %v2046_v10 = vsel %vm679_vm1, %v2004_v56, 0.0  ;;  %v2005_v14 = vmul.f32 %v3677_v52, %v1982_v55  ;;  %v3817_v56 = vshrl.u32 %v2185_v6, 7 }
 0x517   : > { %2047 = vadd.xlane.f32.xlu1 %v2046_v10 }
 0x518   : > { %v2049_v37 = vsel %vm679_vm1, %v2005_v14, 0.0 }
 0x519   : > { %2050 = vadd.xlane.f32.xlu0 %v2049_v37  ;;  %v2198_v37 = vadd.s32 4294967280, %v3814_v59 }
 0x51b   : > { %2053 = vadd.xlane.f32.xlu1 %v2052_v1  ;;  %v2194_v1 = vsub.s32 %v2191_v4, %v3817_v56 }
 0x568   : > { %v2015_v15 = vpop.xlane.xlu0 %2014 }
 0x569   : > { %v2059_v38 = vadd.f32 %v3799_v12, %v2015_v15 }
 0x56b   : > { %v2413_v18 = vmul.f32 -1.442695, %v2059_v38  ;;  %v2189_v38 = vsub.s32 %v3814_v59, %v3817_v56 }
 0x56c   : > { %v2009_v49 = vpop.xlane.xlu0 %2008 }
 0x56d   : > { %v2057_v52 = vadd.f32 %v3799_v12, %v2009_v49  ;;  %2659 = vpow2.f32 %v2413_v18 }
 0x56f   : > { %v2411_v57 = vmul.f32 -1.442695, %v2057_v52  ;;  %v2212_v52 = vadd.s32 4294967264, %v3814_v59 }
 0x570   : > { %v2018_v3 = vpop.xlane.xlu1 %2017 }
 0x571   : > { %v2060_v27 = vadd.f32 %v3799_v12, %v2018_v3 }
 0x573   : > { %v2414_v47 = vmul.f32 -1.442695, %v2060_v27 }
 0x574   : > { %v2012_v13 = vpop.xlane.xlu1 %2011 }
 0x575   : > { %v2058_v7 = vadd.f32 %v3799_v12, %v2012_v13 }
 0x577   : > { %v2412_v8 = vmul.f32 -1.442695, %v2058_v7  ;;  %v2660_v0 = vpop.eup %2659  ;;  %v2205_v7 = vadd.s32 4294967272, %v3814_v59 }
 0x578   : > { %v2027_v51 = vpop.xlane.xlu0 %2026  ;;  %v2123_v26 = vadd.f32 1.0, %v2660_v0 }
 0x579   : > { %2661 = vpow2.f32 %v2412_v8  ;;  %v2063_v42 = vadd.f32 %v3799_v12, %v2027_v51 }
 0x57a   : > { %2663 = vpow2.f32 %v2411_v57  ;;  %v2201_v57 = vsub.s32 %v2198_v37, %v3817_v56 }
 0x57b   : > { %2665 = vpow2.f32 %v2414_v47  ;;  %v2417_v25 = vmul.f32 -1.442695, %v2063_v42 }
 0x57c   : > { %v2021_v62 = vpop.xlane.xlu0 %2020 }
 0x57d   : > { %v2061_v9 = vadd.f32 %v3799_v12, %v2021_v62 }
 0x57f   : > { %v2415_v20 = vmul.f32 -1.442695, %v2061_v9 }
 0x580   : > { %v2030_v23 = vpop.xlane.xlu1 %2029 }
 0x581   : > { %v2064_v36 = vadd.f32 %v3799_v12, %v2030_v23  ;;  %2667 = vpow2.f32 %v2415_v20 }
 0x583   : > { %v2418_v53 = vmul.f32 -1.442695, %v2064_v36  ;;  %v2662_v28 = vpop.eup %2661 }
 0x584   : > { %v2024_v61 = vpop.xlane.xlu1 %2023  ;;  %v2664_v48 = vpop.eup %2663  ;;  %v2122_v19 = vadd.f32 1.0, %v2662_v28 }
 0x585   : > { %v2062_v11 = vadd.f32 %v3799_v12, %v2024_v61  ;;  %v2666_v41 = vpop.eup %2665  ;;  %v2121_v21 = vadd.f32 1.0, %v2664_v48 }
 0x586   : > { %v2124_v58 = vadd.f32 1.0, %v2666_v41 }
 0x587   : > { %v2416_v35 = vmul.f32 -1.442695, %v2062_v11 }
 0x588   : > { %v2039_v30 = vpop.xlane.xlu0 %2038 }
 0x589   : > { %2669 = vpow2.f32 %v2416_v35  ;;  %v2067_v54 = vadd.f32 %v3799_v12, %v2039_v30  ;;  %v2219_v30 = vadd.s32 4294967256, %v3814_v59 }
 0x58a   : > { %2671 = vpow2.f32 %v2417_v25  ;;  %v2215_v25 = vsub.s32 %v2212_v52, %v3817_v56 }
 0x58b   : > { %2673 = vpow2.f32 %v2418_v53  ;;  %v2668_v50 = vpop.eup %2667  ;;  %v2421_v63 = vmul.f32 -1.442695, %v2067_v54 }
 0x58c   : > { %v2033_v29 = vpop.xlane.xlu0 %2032  ;;  %v2125_v34 = vadd.f32 1.0, %v2668_v50 }
 0x58d   : > { %v2065_v32 = vadd.f32 %v3799_v12, %v2033_v29 }
 0x58f   : > { %v2419_v2 = vmul.f32 -1.442695, %v2065_v32  ;;  %v2208_v32 = vsub.s32 %v2205_v7, %v3817_v56 }
 0x590   : > { %v2042_v45 = vpop.xlane.xlu1 %2041 }
 0x591   : > { %2675 = vpow2.f32 %v2419_v2  ;;  %v2068_v31 = vadd.f32 %v3799_v12, %v2042_v45  ;;  %v2222_v2 = vsub.s32 %v2219_v30, %v3817_v56 }
 0x592   : > { %2677 = vrcp.f32 %v2123_v26 }
 0x593   : > { %2679 = vrcp.f32 %v2122_v19  ;;  %v2670_v46 = vpop.eup %2669  ;;  %v2422_v17 = vmul.f32 -1.442695, %v2068_v31 }
 0x594   : > { %v2036_v22 = vpop.xlane.xlu1 %2035  ;;  %v2672_v33 = vpop.eup %2671  ;;  %v2126_v39 = vadd.f32 1.0, %v2670_v46 }
 0x595   : > { %v2066_v43 = vadd.f32 %v3799_v12, %v2036_v22  ;;  %v2674_v44 = vpop.eup %2673  ;;  %v2127_v55 = vadd.f32 1.0, %v2672_v33  ;;  %v2233_v22 = vadd.s32 4294967240, %v3814_v59 }
 0x596   : > { %v2128_v10 = vadd.f32 1.0, %v2674_v44 }
 0x597   : > { %v2420_v16 = vmul.f32 -1.442695, %v2066_v43  ;;  %v2240_v43 = vadd.s32 4294967232, %v3814_v59 }
 0x599   : > { %2681 = vpow2.f32 %v2420_v16 }
 0x59a   : > { %2683 = vrcp.f32 %v2121_v21 }
 0x59b   : > { %2685 = vrcp.f32 %v2124_v58  ;;  %v2676_v24 = vpop.eup %2675  ;;  %v2247_v58 = vadd.s32 4294967224, %v3814_v59 }
 0x59c   : > { %v2045_v5 = vpop.xlane.xlu0 %2044  ;;  %2687 = vpow2.f32 %v2421_v63  ;;  %v2678_v14 = vpop.eup %2677  ;;  %v2129_v15 = vadd.f32 1.0, %v2676_v24 }
 0x59d   : > { %v2069_v60 = vadd.f32 %v3799_v12, %v2045_v5  ;;  %2689 = vrcp.f32 %v2125_v34  ;;  %v2680_v49 = vpop.eup %2679  ;;  %v2202_v26 = vrot.slane %v2678_v14, %v2201_v57  ;;  %v2250_v44 = vsub.s32 %v2247_v58, %v3817_v56 }
 0x59e   : > { %v2195_v61 = vrot.slane %v2680_v49, %v2194_v1  ;;  %v2261_v14 = vadd.s32 4294967208, %v3814_v59  ;;  %v2268_v49 = vadd.s32 4294967200, %v3814_v59 }
 0x59f   : > { %v2423_v40 = vmul.f32 -1.442695, %v2069_v60 }
 0x5a0   : > { %v2264_v57 = vsub.s32 %v2261_v14, %v3817_v56 }
 0x5a1   : > { %2691 = vpow2.f32 %v2423_v40 }
 0x5a2   : > { %2693 = vpow2.f32 %v2422_v17  ;;  %v2243_v17 = vsub.s32 %v2240_v43, %v3817_v56 }
 0x5a3   : > { %2695 = vrcp.f32 %v2126_v39  ;;  %v2682_v13 = vpop.eup %2681  ;;  %v2236_v39 = vsub.s32 %v2233_v22, %v3817_v56 }
 0x5a4   : > { %v2048_v3 = vpop.xlane.xlu1 %2047  ;;  %2697 = vrcp.f32 %v2127_v55  ;;  %v2684_v23 = vpop.eup %2683  ;;  %v2130_v18 = vadd.f32 1.0, %v2682_v13  ;;  %v2254_v55 = vadd.s32 4294967216, %v3814_v59 }
 0x5a5   : > { %v2070_v51 = vadd.f32 %v3799_v12, %v2048_v3  ;;  %2699 = vrcp.f32 %v2128_v10  ;;  %v2686_v9 = vpop.eup %2685  ;;  %v2190_v36 = vrot.slane %v2684_v23, %v2189_v38  ;;  %v2275_v23 = vadd.s32 4294967192, %v3814_v59 }
 0x5a6   : > { %v2051_v62 = vpop.xlane.xlu0 %2050  ;;  %2701 = vrcp.f32 %v2129_v15  ;;  %v2688_v11 = vpop.eup %2687  ;;  %v2209_v16 = vrot.slane %v2686_v9, %v2208_v32  ;;  %v2257_v7 = vsub.s32 %v2254_v55, %v3817_v56 }
 0x5a7   : > { %v2424_v27 = vmul.f32 -1.442695, %v2070_v51  ;;  %v2071_v8 = vadd.f32 %v3799_v12, %v2051_v62  ;;  %2703 = vrcp.f32 %v2130_v18  ;;  %v2690_v42 = vpop.eup %2689  ;;  %v2197_v0 = vsel %vm2196_vm2, %v2195_v61, %v2190_v36 }
 0x5a8   : > { %v2054_v47 = vpop.xlane.xlu1 %2053  ;;  %v2131_v28 = vadd.f32 1.0, %v2688_v11  ;;  %v2204_v19 = vsel %vm2203_vm3, %v2202_v26, %v2197_v0  ;;  %v2216_v54 = vrot.slane %v2690_v42, %v2215_v25  ;;  %v2289_v11 = vadd.s32 4294967176, %v3814_v59 }
 0x5a9   : > { %v2425_v20 = vmul.f32 -1.442695, %v2071_v8  ;;  %v2072_v29 = vadd.f32 %v3799_v12, %v2054_v47  ;;  %2705 = vpow2.f32 %v2424_v27  ;;  %v2226_v12 = vadd.s32 4294967248, %v3814_v59 }
 0x5aa   : > { %v2211_v34 = vsel %vm2210_vm4, %v2209_v16, %v2204_v19  ;;  %v2271_v27 = vsub.s32 %v2268_v49, %v3817_v56  ;;  %v2282_v8 = vadd.s32 4294967184, %v3814_v59  ;;  %v2292_v25 = vsub.s32 %v2289_v11, %v3817_v56 }
 0x5ab   : > { %v2692_v35 = vpop.eup %2691  ;;  %2707 = vpow2.f32 %v2425_v20  ;;  %v2426_v53 = vmul.f32 -1.442695, %v2072_v29  ;;  %v2229_v63 = vsub.s32 %v2226_v12, %v3817_v56  ;;  %v2218_v60 = vsel %vm2217_vm5, %v2216_v54, %v2211_v34 }
 0x5ac   : > { %v2694_v45 = vpop.eup %2693  ;;  %v2133_v41 = vadd.f32 1.0, %v2692_v35  ;;  %v2278_v20 = vsub.s32 %v2275_v23, %v3817_v56  ;;  %v2285_v36 = vsub.s32 %v2282_v8, %v3817_v56 }
 0x5ad   : > { %v2696_v48 = vpop.eup %2695  ;;  %2709 = vpow2.f32 %v2426_v53  ;;  %v2132_v50 = vadd.f32 1.0, %v2694_v45 }
 0x5ae   : > { %v2698_v21 = vpop.eup %2697  ;;  %v2223_v6 = vrot.slane %v2696_v48, %v2222_v2  ;;  %2711 = vrcp.f32 %v2131_v28 }
 0x5af   : > { %v2700_v31 = vpop.eup %2699  ;;  %2713 = vrcp.f32 %v2133_v41  ;;  %v2230_v24 = vrot.slane %v2698_v21, %v2229_v63 }
 0x5b0   : > { %v2702_v46 = vpop.eup %2701  ;;  %2715 = vrcp.f32 %v2132_v50  ;;  %v2225_v40 = vsel %vm2224_vm6, %v2223_v6, %v2218_v60  ;;  %v2237_v51 = vrot.slane %v2700_v31, %v2236_v39 }
 0x5b1   : > { %v2704_v5 = vpop.eup %2703  ;;  %v2232_v15 = vsel %vm2231_vm7, %v2230_v24, %v2225_v40  ;;  %v2244_v3 = vrot.slane %v2702_v46, %v2243_v17 }
 0x5b2   : > { %v2251_v13 = vrot.slane %v2704_v5, %v2250_v44  ;;  %v2239_v62 = vsel %vm2238_vm8, %v2237_v51, %v2232_v15 }
 0x5b3   : > { %v2706_v33 = vpop.eup %2705  ;;  %v2246_v18 = vsel %vm2245_vm9, %v2244_v3, %v2239_v62 }
 0x5b4   : > { %v2134_v10 = vadd.f32 1.0, %v2706_v33  ;;  %v2253_v61 = vsel %vm2252_vm10, %v2251_v13, %v2246_v18 }
 0x5b5   : > { %v2708_v4 = vpop.eup %2707 }
 0x5b6   : > { %v2135_v37 = vadd.f32 1.0, %v2708_v4  ;;  %2717 = vrcp.f32 %v2134_v10 }
 0x5b7   : > { %v2710_v1 = vpop.eup %2709 }
 0x5b8   : > { %2719 = vrcp.f32 %v2135_v37  ;;  %v2136_v38 = vadd.f32 1.0, %v2710_v1  ;;  %v2712_v52 = vpop.eup %2711 }
 0x5b9   : > { %v2714_v9 = vpop.eup %2713  ;;  %v2258_v47 = vrot.slane %v2712_v52, %v2257_v7 }
 0x5ba   : > { %2721 = vrcp.f32 %v2136_v38  ;;  %v2716_v30 = vpop.eup %2715  ;;  %v2272_v42 = vrot.slane %v2714_v9, %v2271_v27 }
 0x5bb   : > { %v2260_v29 = vsel %vm2259_vm11, %v2258_v47, %v2253_v61  ;;  %v2265_v35 = vrot.slane %v2716_v30, %v2264_v57 }
 0x5bd   : > { %v2267_v45 = vsel %vm2266_vm12, %v2265_v35, %v2260_v29 }
 0x5be   : > { %v2274_v2 = vsel %vm2273_vm13, %v2272_v42, %v2267_v45 }
 0x5c0   : > { %v2718_v32 = vpop.eup %2717 }
 0x5c1   : > { %v2279_v0 = vrot.slane %v2718_v32, %v2278_v20 }
 0x5c2   : > { %v2720_v53 = vpop.eup %2719 }
 0x5c3   : > { %v2286_v59 = vrot.slane %v2720_v53, %v2285_v36  ;;  %v2281_v48 = vsel %vm2280_vm14, %v2279_v0, %v2274_v2 }
 0x5c4   : > { %v2722_v28 = vpop.eup %2721 }
 0x5c5   : > { %v2288_v26 = vsel %vm2287_vm15, %v2286_v59, %v2281_v48  ;;  %v2293_v12 = vrot.slane %v2722_v28, %v2292_v25 }
 0x5c7   : > { %v2295_v56 = vsel %vm2294_vm0, %v2293_v12, %v2288_v26 }
 0x5c8   : > { %2297 = vst [vmem:[%s500_s26] sm:$0x1] %v2295_v56 }
 0x5c9   : > { %2736 = shalt.err (!%p2733_p3)
}
 0x5ca   : > { %s2737_s18 = scalar_lea.hbm %s3861_s28, 16  ;;  %s2741_s0 = scalar_lea.hbm %s3918_s15, 32 }
 0x5cb   : > { %p2738_p4 = scmp.ne.s32.totalorder %s3861_s28, %s2737_s18  ;;  %p2742_p9 = scmp.lt.u32.totalorder %s3861_s28, %s3918_s15 }
 0x5cc   : > { %p2743_p10 = scmp.lt.u32.totalorder %s2741_s0, %s2737_s18  ;;  %p2745_p12 = scmp.lt.u32.totalorder %s2737_s18, %s3861_s28 }
 0x5cd   : > { %p2739_p7 = pnand %p2738_p4, %p2906_p5 }
 0x5ce   : > { %p2744_p11 = por %p2743_p10, %p2742_p9 }
 0x5cf   : > { %p2740_p8 = pneg %p2739_p7 }
 0x5d0   : > { %p2746_p13 = por %p2745_p12, %p2744_p11 }
 0x5d2   : > { %p2747_p0 = pnand %p2746_p13, %p2740_p8 }
 0x5d4   : > { %2750 = shalt.err (!%p2747_p0)
}
 0x5d5   : > { %2519 = dma.vmem_to_hbm [thread:$0]  (%p2906_p5), %s3863_s27, 16, %s3861_s28, %s2299_s17  }
 0x5d6 PF: > { %p2525_p1 = scmp.ge.s32.totalorder %s2785_s23, 2  ;;  %s2323_s2 = sand.u32 1, %s2773_s20  }
 0x5d7   : > { %s2324_s16 = scalar_lea.sflag [#allocation4], %s2323_s2 }
 0x5d8   : > { %p2522_p2 = pnand %p2525_p1, %p2910_p6 }
 0x5da   : > { %2768 = dma.done.wait (!%p2522_p2), %s2324_s16, 16  }
 0x5db   : > { %2770 = vsyncadd (!%p2522_p2), %s2324_s16, 4294967280  ;;  %s3928_s19 = sld [smem:[#allocation6_spill]]  ;;  %p26_p3 = scmp.ge.s32.totalorder %s2894_s25, 4  }
 0x5dc   : > { %s3929_s20 = smov %s2777_s21  ;;  %s3930_s21 = smov %s2781_s22 }
 0x5dd   : > { %s3932_s23 = smov %s2894_s25  ;;  %28 = sbr.rel (!%p26_p3) target bundleno = 8 (0x8), region = 115 }
 0x5e1   : > { %s3931_s22 = smov %s3928_s19 }
 0x5e4   :  { %2328 = vsyncpa [#allocation4], 1 }
 0x5e5   :  { %2330 = vsyncpa [#allocation4 + $0x1], 1 }

</bundles_post_ra>
